<compile_context>
chip_gen: v6e
topology: v6e:2x2x1
jax: 0.10.0
libtpu: 0.0.40
codegen_flags: <defaults>
</compile_context>

<pallas_src>
import functools

import jax
import jax.numpy as jnp
from jax import lax
from jax.experimental import pallas as pl
from jax.experimental.pallas import tpu as pltpu


def _round_up(x, m):
    return (x + m - 1) // m * m


def cnn_encoder_kernel(tok_ref, m1_ref, b1_ref, w2_ref, b2_ref, out_ref, *,
                       padded_len, kernel_size, vocab_size):
    # tok_ref : (N, 1)       int32  extended tokens, N = b_tile * padded_len
    #                               (sentinel id == vocab_size => zero padding)
    # m1_ref  : (Vp, K*C1p)  bf16   embedding folded into conv1, taps along cols
    # b1_ref  : (1, C1p)     f32    conv1 bias (zero-padded channels)
    # w2_ref  : (K, C1p, Hp) bf16   conv2 weights, per tap
    # b2_ref  : (1, Hp)      f32    conv2 bias
    # out_ref : (b_tile, Hp) f32    pooled output block (lane-dense)
    N = tok_ref.shape[0]
    Vp = m1_ref.shape[0]
    K = kernel_size
    C1p = m1_ref.shape[1] // K
    Hp = w2_ref.shape[2]
    Sp = padded_len
    pad = K // 2
    Bt = N // Sp

    tok = tok_ref[...]                                     # (N, 1) int32
    valid = tok < vocab_size                               # (N, 1) real-token rows

    # --- embedding gather fused with Conv1d #1 -------------------------------
    # One-hot built ONCE (bf16), one wide single-pass MXU matmul over all taps:
    #   c_all[q, k*C1p + c] = emb[tok[q]] @ W1[k][:, c]   (0 for sentinel rows)
    vocab_iota = lax.broadcasted_iota(jnp.int32, (N, Vp), 1)
    onehot = (tok == vocab_iota).astype(jnp.float32).astype(jnp.bfloat16)
    c_all = jnp.dot(onehot, m1_ref[...],
                    preferred_element_type=jnp.float32)    # (N, K*C1p) f32

    # y1[q] = relu(b1 + sum_k c_all[q + k - pad, chunk k]).  Tap shifts ride
    # the XLU via pltpu.roll; rolled-in wrapped rows only ever land on rows
    # that are already invalid (>= pad sentinels surround every sequence).
    y1 = jnp.zeros((N, C1p), jnp.float32)
    for k in range(K):                                     # K static & tiny
        chunk = c_all[:, k * C1p:(k + 1) * C1p]            # lane-aligned slice
        if k != pad:
            chunk = pltpu.roll(chunk, shift=(pad - k) % N, axis=0)
        y1 = y1 + chunk
    y1 = jnp.maximum(y1 + b1_ref[...], 0.0)
    y1 = jnp.where(valid, y1, 0.0)     # == Conv1d #2 zero padding at seq edges

    # --- Conv1d #2: per-tap accumulating bf16 matmuls (contraction = C1p) ----
    y2 = jnp.zeros((N, Hp), jnp.float32)
    for k in range(K):
        tap = y1 if k == pad else pltpu.roll(y1, shift=(pad - k) % N, axis=0)
        y2 = y2 + jnp.dot(tap.astype(jnp.bfloat16), w2_ref[k],
                          preferred_element_type=jnp.float32)
    y2 = y2 + b2_ref[...]

    # --- AdaptiveMaxPool1d(1): one vectorized reduce + one lane-dense store --
    # (finite mask value so fully-padded batch rows stay finite in `out`)
    y2 = jnp.where(valid, y2, jnp.finfo(jnp.float32).min)
    out_ref[...] = jnp.max(y2.reshape(Bt, Sp, Hp), axis=1)


def cnn_encoder_forward(x_tokens, params, kernel_size, *, b_tile=32):
    """x_tokens: (S, B) int token ids.  Returns (seq, h_0), each (1, B, hid_dim)."""
    emb = params["emb"]
    w1, b1, w2, b2 = params["w1"], params["b1"], params["w2"], params["b2"]

    S, B = x_tokens.shape
    V, E = emb.shape
    K = kernel_size
    assert K % 2 == 1, "only odd kernel sizes match PyTorch's padding=K//2 here"
    pad = K // 2
    C1 = w1.shape[2]
    H = w2.shape[2]

    f32, bf16 = jnp.float32, jnp.bfloat16

    # Lane-dense padding: channels to 128 lanes, vocab (incl. sentinel) to 128.
    C1p = _round_up(max(C1, 128), 128)
    Hp = _round_up(max(H, 128), 128)
    Vp = _round_up(V + 1, 128)

    # Per-sequence extended frame: [pad sentinels | S tokens | back sentinels].
    Sp = _round_up(S + 2 * pad, 8)
    assert Sp >= S + 2 * pad, "roll-wrapped rows must land on sentinel rows"

    # Batch tiling: large tiles (big MXU M dim, fewer grid steps) but never
    # larger than the padded batch.
    # TODO(synk): on v7x pick b_tile so Bp // b_tile >= 2, so that
    # dimension_semantics=("parallel",) actually shards across both TensorCores.
    b_tile = max(8, min(_round_up(b_tile, 8), _round_up(B, 8)))
    Bp = _round_up(B, b_tile)
    N = b_tile * Sp                        # matmul M dim per grid step

    # ---- weight preprocessing (tiny, once per call, plain XLA) --------------
    emb_b = emb.astype(bf16).astype(f32)
    w1_b = w1.astype(bf16).astype(f32)
    # Fold the embedding into conv1, taps concatenated along output channels:
    #   m1_all[v, k*C1p + c] = emb[v] @ W1[k][:, c]   (bf16 -> single-pass MXU)
    m1 = jnp.einsum("ve,kec->vkc", emb_b, w1_b,
                    precision=lax.Precision.HIGHEST)        # (V, K, C1)
    m1 = jnp.pad(m1, ((0, Vp - V), (0, 0), (0, C1p - C1)))
    m1_all = m1.reshape(Vp, K * C1p).astype(bf16)
    # TODO(synk): for a large vocab keep this table in HBM (memory_space=pl.ANY)
    # and DMA-gather the tile's rows instead of the one-hot matmul (v7x: 64 MiB
    # VMEM), optionally with pipeline_mode=pl.Buffered(1) on the constant specs.
    b1p = jnp.zeros((1, C1p), f32).at[:, :C1].set(b1.reshape(1, C1))
    w2p = jnp.zeros((K, C1p, Hp), bf16).at[:, :C1, :H].set(w2.astype(bf16))
    b2p = jnp.zeros((1, Hp), f32).at[:, :H].set(b2.reshape(1, H))

    # ---- tokens: ONE extended row per sequence (sentinel id V == zero pad) --
    # TODO(synk): nn.Dropout(p) implemented as eval-mode identity (training mode
    # would need pltpu.prng_* masking + 1/(1-p) scaling on the embeddings).
    tb = jnp.transpose(x_tokens, (1, 0)).astype(jnp.int32)   # (B, S)
    ext = jnp.pad(tb, ((0, Bp - B), (pad, Sp - S - pad)), constant_values=V)
    tok_flat = ext.reshape(Bp * Sp, 1)

    kernel = functools.partial(cnn_encoder_kernel, padded_len=Sp,
                               kernel_size=K, vocab_size=V)

    out = pl.pallas_call(
        kernel,
        out_shape=jax.ShapeDtypeStruct((Bp, Hp), f32),
        grid_spec=pltpu.PrefetchScalarGridSpec(
            num_scalar_prefetch=0,
            grid=(Bp // b_tile,),
            in_specs=[
                pl.BlockSpec((N, 1), lambda i: (i, 0)),           # tokens
                pl.BlockSpec((Vp, K * C1p), lambda i: (0, 0)),    # emb @ W1 (bf16)
                pl.BlockSpec((1, C1p), lambda i: (0, 0)),         # b1
                pl.BlockSpec((K, C1p, Hp), lambda i: (0, 0, 0)),  # W2 (bf16)
                pl.BlockSpec((1, Hp), lambda i: (0, 0)),          # b2
            ],
            out_specs=pl.BlockSpec((b_tile, Hp), lambda i: (i, 0)),
        ),
        compiler_params=pltpu.CompilerParams(
            # Batch-tile axis is embarrassingly parallel; no cross-step state
            # (no scratch) so megacore sharding is safe.
            dimension_semantics=("parallel",),
        ),
    )(tok_flat, m1_all, b1p, w2p, b2p)

    pooled = out[:B, :H]                   # strip batch / channel padding
    seq = pooled[None, :, :]               # (1, B, H), PyTorch convention
    # The module's trailing AdaptiveMaxPool1d acts on a length-1 axis => h_0 == seq.
    return seq, seq


def ref_forward(x_tokens, params, K):
    """Pure-JAX reference mirroring the PyTorch forward (eval-mode dropout) and
    (approximately) the kernel's precision policy: bf16-rounded emb/W1/W2, bf16
    conv2 activations, f32 accumulation.  The kernel additionally rounds the
    folded emb@W1 product to bf16; that stays well inside the 2e-2 tolerance."""
    pad = K // 2
    f32, bf16 = jnp.float32, jnp.bfloat16
    emb = params["emb"].astype(bf16).astype(f32)
    w1 = params["w1"].astype(bf16).astype(f32)
    w2 = params["w2"].astype(bf16).astype(f32)

    x = jnp.take(emb, x_tokens, axis=0)              # (S, B, E)
    x = jnp.transpose(x, (1, 2, 0))                  # (B, E, S) like torch

    def conv1d(x_ncl, w_kio, b):
        w = jnp.transpose(w_kio, (2, 1, 0))          # (Cout, Cin, K)
        y = jax.lax.conv_general_dilated(
            x_ncl, w, window_strides=(1,), padding=[(pad, pad)],
            dimension_numbers=("NCH", "OIH", "NCH"),
            precision=jax.lax.Precision.HIGHEST)
        return y + b.reshape(1, -1, 1)

    y1 = jax.nn.relu(conv1d(x, w1, params["b1"]))
    y1 = y1.astype(bf16).astype(f32)                 # kernel feeds conv2 in bf16
    y2 = conv1d(y1, w2, params["b2"])
    pooled = jnp.max(y2, axis=2, keepdims=True)      # (B, H, 1)
    seq = jnp.transpose(pooled, (2, 0, 1))           # (1, B, H)
    return seq, seq


if __name__ == "__main__":
    # Module hyper-params (len(kernel_sizes) == 2 is required by the module's
    # own channel arithmetic: conv2 expects emb_dim * len(kernel_sizes) in-ch).
    vocab_size, emb_dim, hid_dim = 50, 8, 32
    kernel_sizes = [3, 3]
    K = kernel_sizes[-1]
    C1 = emb_dim * 2
    S, B = 8, 2

    key = jax.random.PRNGKey(0)
    k_emb, k_w1, k_b1, k_w2, k_b2, k_x = jax.random.split(key, 6)
    params = dict(
        emb=jax.random.normal(k_emb, (vocab_size, emb_dim), jnp.float32),
        # torch Conv1d weight is (C_out, C_in, K); stored here as (K, C_in, C_out)
        w1=jax.random.normal(k_w1, (K, emb_dim, C1), jnp.float32) * 0.1,
        b1=jax.random.normal(k_b1, (1, C1), jnp.float32) * 0.1,
        w2=jax.random.normal(k_w2, (K, C1, hid_dim), jnp.float32) * 0.1,
        b2=jax.random.normal(k_b2, (1, hid_dim), jnp.float32) * 0.1,
    )
    x_tokens = jax.random.randint(k_x, (S, B), 0, vocab_size, jnp.int32)

    seq, h_0 = cnn_encoder_forward(x_tokens, params, K)
    jax.block_until_ready((seq, h_0))

    seq_ref, h0_ref = ref_forward(x_tokens, params, K)
    assert seq.shape == (1, B, hid_dim) and h_0.shape == (1, B, hid_dim)
    assert jnp.allclose(seq, seq_ref, atol=2e-2), "seq mismatch vs reference"
    assert jnp.allclose(h_0, h0_ref, atol=2e-2), "h_0 mismatch vs reference"

    print("KERNEL_OK")
</pallas_src>

<mosaic_0001>
module attributes {stable_mosaic.version = 11 : i64} {
  func.func @cnn_encoder_kernel(%arg0: i32, %arg1: memref<128x1xi32, #tpu.memory_space<vmem>>, %arg2: memref<128x384xbf16, #tpu.memory_space<vmem>>, %arg3: memref<1x128xf32, #tpu.memory_space<vmem>>, %arg4: memref<3x128x128xbf16, #tpu.memory_space<vmem>>, %arg5: memref<1x128xf32, #tpu.memory_space<vmem>>, %arg6: memref<8x128xf32, #tpu.memory_space<vmem>>) attributes {dimension_semantics = [#tpu.dimension_semantics<parallel>], iteration_bounds = array<i64: 1>, scalar_prefetch = 0 : i64, scratch_operands = 0 : i64, tpu.core_type = #tpu.core_type<tc>, window_params = [{transform_indices = @transform_0, window_bounds = array<i64: 128, 1>}, {pipeline_mode = #tpu.pipeline_mode<synchronous>, transform_indices = @transform_1, window_bounds = array<i64: 128, 384>}, {pipeline_mode = #tpu.pipeline_mode<synchronous>, transform_indices = @transform_2, window_bounds = array<i64: 1, 128>}, {pipeline_mode = #tpu.pipeline_mode<synchronous>, transform_indices = @transform_3, window_bounds = array<i64: 3, 128, 128>}, {pipeline_mode = #tpu.pipeline_mode<synchronous>, transform_indices = @transform_4, window_bounds = array<i64: 1, 128>}, {transform_indices = @transform_5, window_bounds = array<i64: 8, 128>}]} {
    %c0 = arith.constant 0 : index
    %c0_0 = arith.constant 0 : index
    %0 = vector.load %arg1[%c0, %c0_0] : memref<128x1xi32, #tpu.memory_space<vmem>>, vector<128x1xi32>
    %c50_i32 = arith.constant 50 : i32
    %1 = vector.broadcast %c50_i32 : i32 to vector<128x1xi32>
    %2 = arith.cmpi slt, %0, %1 : vector<128x1xi32>
    %3 = tpu.iota {dimensions = array<i32: 1>} : vector<128x128xi32>
    %4 = vector.broadcast %0 : vector<128x1xi32> to vector<128x128xi32>
    %5 = arith.cmpi eq, %4, %3 : vector<128x128xi32>
    %6 = arith.extui %5 : vector<128x128xi1> to vector<128x128xi32>
    %7 = arith.sitofp %6 : vector<128x128xi32> to vector<128x128xf32>
    %8 = arith.truncf %7 : vector<128x128xf32> to vector<128x128xbf16>
    %c0_1 = arith.constant 0 : index
    %c0_2 = arith.constant 0 : index
    %9 = vector.load %arg2[%c0_1, %c0_2] : memref<128x384xbf16, #tpu.memory_space<vmem>>, vector<128x384xbf16>
    %cst = arith.constant dense<0.000000e+00> : vector<128x384xf32>
    %10 = tpu.matmul %8, %9, %cst {dimension_numbers = #tpu.dot_dimension_numbers<[1], [0], [0], [1], [0, 0, 1, 1], [], []>} : vector<128x128xbf16>, vector<128x384xbf16>, vector<128x384xf32> -> vector<128x384xf32>
    %cst_3 = arith.constant 0.000000e+00 : f32
    %11 = vector.broadcast %cst_3 : f32 to vector<128x128xf32>
    %12 = vector.extract_strided_slice %10 {offsets = [0, 0], sizes = [128, 128], strides = [1, 1]} : vector<128x384xf32> to vector<128x128xf32>
    %c1_i32 = arith.constant 1 : i32
    %13 = tpu.dynamic_rotate %12 by %c1_i32 dim 0 : vector<128x128xf32>, i32 -> vector<128x128xf32>
    %14 = arith.addf %11, %13 : vector<128x128xf32>
    %15 = vector.extract_strided_slice %10 {offsets = [0, 128], sizes = [128, 128], strides = [1, 1]} : vector<128x384xf32> to vector<128x128xf32>
    %16 = arith.addf %14, %15 : vector<128x128xf32>
    %17 = vector.extract_strided_slice %10 {offsets = [0, 256], sizes = [128, 128], strides = [1, 1]} : vector<128x384xf32> to vector<128x128xf32>
    %c127_i32 = arith.constant 127 : i32
    %18 = tpu.dynamic_rotate %17 by %c127_i32 dim 0 : vector<128x128xf32>, i32 -> vector<128x128xf32>
    %19 = arith.addf %16, %18 : vector<128x128xf32>
    %c0_4 = arith.constant 0 : index
    %c0_5 = arith.constant 0 : index
    %20 = vector.load %arg3[%c0_4, %c0_5] : memref<1x128xf32, #tpu.memory_space<vmem>>, vector<1x128xf32>
    %21 = vector.broadcast %20 : vector<1x128xf32> to vector<128x128xf32>
    %22 = arith.addf %19, %21 : vector<128x128xf32>
    %cst_6 = arith.constant 0.000000e+00 : f32
    %23 = vector.broadcast %cst_6 : f32 to vector<128x128xf32>
    %24 = arith.maximumf %22, %23 : vector<128x128xf32>
    %cst_7 = arith.constant 0.000000e+00 : f32
    %25 = vector.shape_cast %2 : vector<128x1xi1> to vector<128x1xi1>
    %26 = vector.broadcast %25 : vector<128x1xi1> to vector<128x128xi1>
    %27 = vector.broadcast %cst_7 : f32 to vector<128x128xf32>
    %28 = arith.select %26, %24, %27 : vector<128x128xi1>, vector<128x128xf32>
    %cst_8 = arith.constant 0.000000e+00 : f32
    %29 = vector.broadcast %cst_8 : f32 to vector<128x128xf32>
    %c1_i32_9 = arith.constant 1 : i32
    %30 = tpu.dynamic_rotate %28 by %c1_i32_9 dim 0 : vector<128x128xf32>, i32 -> vector<128x128xf32>
    %31 = arith.truncf %30 : vector<128x128xf32> to vector<128x128xbf16>
    %c0_10 = arith.constant 0 : index
    %c0_11 = arith.constant 0 : index
    %c0_12 = arith.constant 0 : index
    %32 = vector.load %arg4[%c0_10, %c0_11, %c0_12] : memref<3x128x128xbf16, #tpu.memory_space<vmem>>, vector<1x128x128xbf16>
    %33 = vector.shape_cast %32 : vector<1x128x128xbf16> to vector<128x128xbf16>
    %cst_13 = arith.constant dense<0.000000e+00> : vector<128x128xf32>
    %34 = tpu.matmul %31, %33, %cst_13 {dimension_numbers = #tpu.dot_dimension_numbers<[1], [0], [0], [1], [0, 0, 1, 1], [], []>} : vector<128x128xbf16>, vector<128x128xbf16>, vector<128x128xf32> -> vector<128x128xf32>
    %35 = arith.addf %29, %34 : vector<128x128xf32>
    %36 = arith.truncf %28 : vector<128x128xf32> to vector<128x128xbf16>
    %c1 = arith.constant 1 : index
    %c0_14 = arith.constant 0 : index
    %c0_15 = arith.constant 0 : index
    %37 = vector.load %arg4[%c1, %c0_14, %c0_15] : memref<3x128x128xbf16, #tpu.memory_space<vmem>>, vector<1x128x128xbf16>
    %38 = vector.shape_cast %37 : vector<1x128x128xbf16> to vector<128x128xbf16>
    %cst_16 = arith.constant dense<0.000000e+00> : vector<128x128xf32>
    %39 = tpu.matmul %36, %38, %cst_16 {dimension_numbers = #tpu.dot_dimension_numbers<[1], [0], [0], [1], [0, 0, 1, 1], [], []>} : vector<128x128xbf16>, vector<128x128xbf16>, vector<128x128xf32> -> vector<128x128xf32>
    %40 = arith.addf %35, %39 : vector<128x128xf32>
    %c127_i32_17 = arith.constant 127 : i32
    %41 = tpu.dynamic_rotate %28 by %c127_i32_17 dim 0 : vector<128x128xf32>, i32 -> vector<128x128xf32>
    %42 = arith.truncf %41 : vector<128x128xf32> to vector<128x128xbf16>
    %c2 = arith.constant 2 : index
    %c0_18 = arith.constant 0 : index
    %c0_19 = arith.constant 0 : index
    %43 = vector.load %arg4[%c2, %c0_18, %c0_19] : memref<3x128x128xbf16, #tpu.memory_space<vmem>>, vector<1x128x128xbf16>
    %44 = vector.shape_cast %43 : vector<1x128x128xbf16> to vector<128x128xbf16>
    %cst_20 = arith.constant dense<0.000000e+00> : vector<128x128xf32>
    %45 = tpu.matmul %42, %44, %cst_20 {dimension_numbers = #tpu.dot_dimension_numbers<[1], [0], [0], [1], [0, 0, 1, 1], [], []>} : vector<128x128xbf16>, vector<128x128xbf16>, vector<128x128xf32> -> vector<128x128xf32>
    %46 = arith.addf %40, %45 : vector<128x128xf32>
    %c0_21 = arith.constant 0 : index
    %c0_22 = arith.constant 0 : index
    %47 = vector.load %arg5[%c0_21, %c0_22] : memref<1x128xf32, #tpu.memory_space<vmem>>, vector<1x128xf32>
    %48 = vector.broadcast %47 : vector<1x128xf32> to vector<128x128xf32>
    %49 = arith.addf %46, %48 : vector<128x128xf32>
    %cst_23 = arith.constant -3.40282347E+38 : f32
    %50 = vector.shape_cast %2 : vector<128x1xi1> to vector<128x1xi1>
    %51 = vector.broadcast %50 : vector<128x1xi1> to vector<128x128xi1>
    %52 = vector.broadcast %cst_23 : f32 to vector<128x128xf32>
    %53 = arith.select %51, %49, %52 : vector<128x128xi1>, vector<128x128xf32>
    %54 = vector.shape_cast %53 : vector<128x128xf32> to vector<8x16x128xf32>
    %cst_24 = arith.constant dense<0xFF800000> : vector<8x128xf32>
    %55 = vector.multi_reduction <maximumf>, %54, %cst_24 [1] : vector<8x16x128xf32> to vector<8x128xf32>
    %c0_25 = arith.constant 0 : index
    %c0_26 = arith.constant 0 : index
    %56 = vector.load %arg6[%c0_25, %c0_26] : memref<8x128xf32, #tpu.memory_space<vmem>>, vector<8x128xf32>
    tpu.vector_store %arg6[%c0_25, %c0_26], %55 {strides = array<i32>} : memref<8x128xf32, #tpu.memory_space<vmem>>, vector<8x128xf32>,
    return
  }
  func.func @transform_0(%arg0: i32) -> (i32, i32) {
    %c0_i32 = arith.constant 0 : i32
    %c0_i32_0 = arith.constant 0 : i32
    return %arg0, %c0_i32 : i32, i32
  }
  func.func @transform_1(%arg0: i32) -> (i32, i32) {
    %c0_i32 = arith.constant 0 : i32
    %c0_i32_0 = arith.constant 0 : i32
    %c0_i32_1 = arith.constant 0 : i32
    return %c0_i32, %c0_i32_0 : i32, i32
  }
  func.func @transform_2(%arg0: i32) -> (i32, i32) {
    %c0_i32 = arith.constant 0 : i32
    %c0_i32_0 = arith.constant 0 : i32
    %c0_i32_1 = arith.constant 0 : i32
    return %c0_i32, %c0_i32_0 : i32, i32
  }
  func.func @transform_3(%arg0: i32) -> (i32, i32, i32) {
    %c0_i32 = arith.constant 0 : i32
    %c0_i32_0 = arith.constant 0 : i32
    %c0_i32_1 = arith.constant 0 : i32
    %c0_i32_2 = arith.constant 0 : i32
    return %c0_i32, %c0_i32_0, %c0_i32_1 : i32, i32, i32
  }
  func.func @transform_4(%arg0: i32) -> (i32, i32) {
    %c0_i32 = arith.constant 0 : i32
    %c0_i32_0 = arith.constant 0 : i32
    %c0_i32_1 = arith.constant 0 : i32
    return %c0_i32, %c0_i32_0 : i32, i32
  }
  func.func @transform_5(%arg0: i32) -> (i32, i32) {
    %c0_i32 = arith.constant 0 : i32
    %c0_i32_0 = arith.constant 0 : i32
    return %arg0, %c0_i32 : i32, i32
  }
}

</mosaic_0001>

<bundles_post_ra>
// kernel: tpu_custom_call.1
= control target key start
LH: loop header
LB: loop body
LE: loop exit
PB: predicated region body
PF: predicated region fallthrough
CT: control target
= control target key end

     0   :  { %10 = vsyncpa [#allocation3], 0  ;;  %s2813_s0 = inlined_call_operand.vmem [shape: s32[128,1], index: 0, kind: input, shape index: {}]   ;;  %s2814_s1 = inlined_call_operand.hbm [shape: bf16[128,384], index: 1, kind: input, shape index: {}]   ;;  %s2815_s2 = inlined_call_operand.vmem [shape: f32[1,128], index: 2, kind: input, shape index: {}]   ;;  %s2816_s3 = inlined_call_operand.hbm [shape: bf16[3,128,128], index: 3, kind: input, shape index: {}]   ;;  %s2817_s4 = inlined_call_operand.vmem [shape: f32[1,128], index: 4, kind: input, shape index: {}]   ;;  %s2818_s5 = inlined_call_operand.hbm [shape: f32[8,128], index: 5, kind: output, shape index: {}]  }
   0x1   :  { %11 = vsyncpa [#allocation6], 0 }
   0x2   :  { %12 = vsyncpa [#allocation4], 0  ;;  %s1980_s18 = smov [#allocation2]  }
   0x3   :  { %s20_s19 = sshll.u32 %s1980_s18, 4  ;;  %s21_s19 = int_to_ptr.vmem [resolvable:$true] %s20_s19 }
   0x4   :  { %s1922_s20 = scalar_lea.vmem %s21_s19, 3072  ;;  %p1927_p1 = scmp.lt.s32.totalorder %s21_s19, %s21_s19 }
   0x5   :  { %p1923_p0 = scmp.ne.s32.totalorder %s21_s19, %s1922_s20  ;;  %p1928_p2 = scmp.lt.s32.totalorder %s1922_s20, %s1922_s20 }
   0x7   :  { %p1929_p3 = por %p1928_p2, %p1927_p1 }
   0x9   :  { %p1930_p4 = pnand %p1929_p3, %p1923_p0 }
   0xb   :  { %1933 = shalt.err (!%p1930_p4)
}
   0xc   :  { %s1981_s21 = smov 192   ;;  %s1982_s22 = smov 12  }
   0xd   :  { %26 = dma.hbm_to_vmem [thread:$0]  %s2814_s1, 3072, %s21_s19, [#allocation3], %s1981_s21, %s1981_s21, %s1982_s22  }
   0xe   :  { %s1983_s25 = smov [#allocation5]  }
   0xf   :  { %s34_s26 = sshll.u32 %s1983_s25, 4  ;;  %s35_s26 = int_to_ptr.vmem [resolvable:$true] %s34_s26 }
  0x10   :  { %s1942_s27 = scalar_lea.vmem %s35_s26, 3072  ;;  %p1947_p6 = scmp.lt.s32.totalorder %s35_s26, %s35_s26 }
  0x11   :  { %p1943_p5 = scmp.ne.s32.totalorder %s35_s26, %s1942_s27  ;;  %p1948_p7 = scmp.lt.s32.totalorder %s1942_s27, %s1942_s27 }
  0x13   :  { %p1949_p8 = por %p1948_p7, %p1947_p6 }
  0x15   :  { %p1950_p9 = pnand %p1949_p8, %p1943_p5 }
  0x17   :  { %1953 = shalt.err (!%p1950_p9)
}
  0x18   :  { %s1984_s28 = smov 64   ;;  %s1985_s29 = smov 4  }
  0x19   :  { %40 = dma.hbm_to_vmem [thread:$0]  %s2816_s3, 3072, %s35_s26, [#allocation6], %s1984_s28, %s1984_s28, %s1985_s29  }
  0x1a   :  { %1974 = dma.done.wait [#allocation3], 3072  }
  0x1b   :  { %1975 = vsyncadd [#allocation3], 4294964224 }
  0x1c   :  { %1976 = dma.done.wait [#allocation6], 3072  }
  0x1d   :  { %1977 = vsyncadd [#allocation6], 4294964224  ;;  %v1986_v0 = vmov 0   ;;  %v52_v1 = vld [vmem:[%s2813_s0 + $0x10] sm:$0xff]  ;;  %v50_v2 = vld [vmem:[%s2813_s0] sm:$0xff]  ;;  %v82_v57 = vlaneseq }
  0x1e   :  { %1857 = vset.pattern.permute.xlu1 %v1986_v0  ;;  %1856 = vset.pattern.permute.xlu0 %v1986_v0  ;;  %v53_v3 = vld [vmem:[%s2813_s0 + $0x18] sm:$0xff]  ;;  %v51_v4 = vld [vmem:[%s2813_s0 + $0x8] sm:$0xff]  ;;  %v54_v6 = vld [vmem:[%s2813_s0 + $0x20] sm:$0xff]  ;;  %vm66_vm0 = vcmp.lt.s32.totalorder %v50_v2, 50  ;;  %vm68_vm2 = vcmp.lt.s32.totalorder %v52_v1, 50 }
  0x1f   :  { %380 = vmatprep.mubr.bf16.mxu0 %v1986_v0  ;;  %91 = vperm.xlu1 %1857, %v52_v1   ;;  %v55_v5 = vld [vmem:[%s2813_s0 + $0x28] sm:$0xff]  ;;  %v2049_v8 = vld [vmem:[%s2813_s0 + $0x38] sm:$0xff]  ;;  %v2054_v10 = vld [vmem:[%s2813_s0 + $0x30] sm:$0xff]  ;;  %vm69_vm1 = vcmp.lt.s32.totalorder %v53_v3, 50  ;;  %vm67_vm3 = vcmp.lt.s32.totalorder %v51_v4, 50  ;;  %v713_v25 = vsel %vm66_vm0, 1, %v1986_v0 }
  0x20   :  { %85 = vperm.xlu0 %1856, %v50_v2   ;;  %v1858_v7 = vld [vmem:[#allocation2 + $0xac] ss:$12 sps:$4 sm:$0xff]   ;;  %v1860_v9 = vld [vmem:[#allocation2 + $0xa8] ss:$12 sps:$4 sm:$0xff]   ;;  %v1861_v11 = vld [vmem:[#allocation2 + $0xb0] ss:$12 sps:$4 sm:$0xff]  }
  0x21   :  { %348 = vmatprep.subr.bf16.mxu0 %v1858_v7  ;;  %v1862_v12 = vld [vmem:[#allocation2 + $0x94] ss:$12 sps:$4 sm:$0xff]   ;;  %v1864_v13 = vld [vmem:[#allocation2 + $0x90] ss:$12 sps:$4 sm:$0xff]   ;;  %1719 = vmatprep.subr.bf16.mxu1 %v1861_v11  ;;  %v1865_v14 = vld [vmem:[#allocation2 + $0x98] ss:$12 sps:$4 sm:$0xff]  }
  0x22   :  { %349 = vmatpush1.bf16.msra.mxu0 %v1860_v9  ;;  %v2061_v15 = vld [vmem:[%s2813_s0 + $0x48] sm:$0xff]  ;;  %v2066_v17 = vld [vmem:[%s2813_s0 + $0x40] sm:$0xff]  ;;  %1720 = vmatpush3.bf16.msra.mxu1 %v1861_v11  ;;  %v2071_v20 = vld [vmem:[%s2813_s0 + $0x58] sm:$0xff]  ;;  %v716_v26 = vsel %vm69_vm1, 1, %v1986_v0  ;;  %vm71_vm4 = vcmp.lt.s32.totalorder %v55_v5, 50  ;;  %vm70_vm5 = vcmp.lt.s32.totalorder %v54_v6, 50 }
  0x23   :  { %94 = vperm.xlu1 %1857, %v53_v3   ;;  %v1866_v16 = vld [vmem:[#allocation2 + $0x7c] ss:$12 sps:$4 sm:$0xff]   ;;  %350 = vmatprep.subr.bf16.mxu0 %v1862_v12  ;;  %v1868_v18 = vld [vmem:[#allocation2 + $0x78] ss:$12 sps:$4 sm:$0xff]   ;;  %v1869_v19 = vld [vmem:[#allocation2 + $0x80] ss:$12 sps:$4 sm:$0xff]  }
  0x24   :  { %88 = vperm.xlu0 %1856, %v51_v4   ;;  %1721 = vmatprep.subr.bf16.mxu1 %v1865_v14  ;;  %v1870_v21 = vld [vmem:[#allocation2 + $0x64] ss:$12 sps:$4 sm:$0xff]   ;;  %v1872_v23 = vld [vmem:[#allocation2 + $0x60] ss:$12 sps:$4 sm:$0xff]   ;;  %v1873_v24 = vld [vmem:[#allocation2 + $0x68] ss:$12 sps:$4 sm:$0xff]  }
  0x25   :  { %v2078_v22 = vld [vmem:[%s2813_s0 + $0x50] sm:$0xff]  ;;  %v1874_v27 = vld [vmem:[#allocation2 + $0x4c] ss:$12 sps:$4 sm:$0xff]   ;;  %v2092_v29 = vld [vmem:[%s2813_s0 + $0x60] sm:$0xff]  ;;  %v714_v30 = vsel %vm67_vm3, 1, %v1986_v0  ;;  %v715_v31 = vsel %vm68_vm2, 1, %v1986_v0 }
  0x26   :  { %351 = vmatpush1.bf16.msra.mxu0 %v1864_v13  ;;  %1722 = vmatpush3.bf16.msra.mxu1 %v1865_v14  ;;  %v2087_v28 = vld [vmem:[%s2813_s0 + $0x68] sm:$0xff]  ;;  %v1877_v33 = vld [vmem:[#allocation2 + $0x50] ss:$12 sps:$4 sm:$0xff]   ;;  %v718_v36 = vsel %vm71_vm4, 1, %v1986_v0  ;;  %v717_v37 = vsel %vm70_vm5, 1, %v1986_v0  ;;  %vm73_vm6 = vcmp.lt.s32.totalorder %v2049_v8, 50 }
  0x27   :  { %100 = vperm.xlu1 %1857, %v55_v5   ;;  %352 = vmatprep.subr.bf16.mxu0 %v1866_v16  ;;  %v1876_v32 = vld [vmem:[#allocation2 + $0x48] ss:$12 sps:$4 sm:$0xff]   ;;  %v2100_v34 = vld [vmem:[%s2813_s0 + $0x78] sm:$0xff]  ;;  %v1885_v43 = vld [vmem:[#allocation2 + $0x20] ss:$12 sps:$4 sm:$0xff]   ;;  %vm72_vm7 = vcmp.lt.s32.totalorder %v2054_v10, 50 }
  0x28   :  { %97 = vperm.xlu0 %1856, %v54_v6   ;;  %1723 = vmatprep.subr.bf16.mxu1 %v1869_v19  ;;  %v2105_v35 = vld [vmem:[%s2813_s0 + $0x70] sm:$0xff]  ;;  %v1881_v40 = vld [vmem:[#allocation2 + $0x38] ss:$12 sps:$4 sm:$0xff]   ;;  %v1882_v41 = vld [vmem:[#allocation2 + $0x1c] ss:$12 sps:$4 sm:$0xff]   ;;  %v720_v47 = vsel %vm73_vm6, 1, %v1986_v0 }
  0x29   :  { %v1878_v38 = vld [vmem:[#allocation2 + $0x34] ss:$12 sps:$4 sm:$0xff]   ;;  %v1880_v39 = vld [vmem:[#allocation2 + $0x30] ss:$12 sps:$4 sm:$0xff]   ;;  %v1884_v42 = vld [vmem:[#allocation2 + $0x18] ss:$12 sps:$4 sm:$0xff]  }
  0x2a   :  { %353 = vmatpush1.bf16.msra.mxu0 %v1868_v18  ;;  %1724 = vmatpush3.bf16.msra.mxu1 %v1869_v19  ;;  %v1886_v44 = vld [vmem:[#allocation2 + $0x4] ss:$12 sps:$4 sm:$0xff]   ;;  %v1888_v45 = vld [vmem:[#allocation2] ss:$12 sps:$4 sm:$0xff]   ;;  %v1889_v46 = vld [vmem:[#allocation2 + $0x8] ss:$12 sps:$4 sm:$0xff]  }
  0x2b   :  { %106 = vperm.xlu1 %1857, %v2049_v8   ;;  %354 = vmatprep.subr.bf16.mxu0 %v1870_v21  ;;  %v719_v48 = vsel %vm72_vm7, 1, %v1986_v0  ;;  %vm75_vm8 = vcmp.lt.s32.totalorder %v2061_v15, 50  ;;  %vm74_vm9 = vcmp.lt.s32.totalorder %v2066_v17, 50  ;;  %vm77_vm10 = vcmp.lt.s32.totalorder %v2071_v20, 50  ;;  %v1891_v18 = vld [vmem:[#allocation5 + $0x78] sm:$0xff]   ;;  %v1893_v21 = vld [vmem:[#allocation5 + $0x30] sm:$0xff]  }
  0x2c   :  { %103 = vperm.xlu0 %1856, %v2054_v10   ;;  %1725 = vmatprep.subr.bf16.mxu1 %v1873_v24  ;;  %v722_v49 = vsel %vm75_vm8, 1, %v1986_v0  ;;  %v721_v50 = vsel %vm74_vm9, 1, %v1986_v0  ;;  %vm76_vm11 = vcmp.lt.s32.totalorder %v2078_v22, 50  ;;  %v724_v51 = vsel %vm77_vm10, 1, %v1986_v0  ;;  %v1890_v19 = vld [vmem:[#allocation5 + $0x38] sm:$0xff]  }
  0x2d   :  { %v723_v52 = vsel %vm76_vm11, 1, %v1986_v0  ;;  %vm79_vm12 = vcmp.lt.s32.totalorder %v2087_v28, 50  ;;  %vm78_vm13 = vcmp.lt.s32.totalorder %v2092_v29, 50  ;;  %vm81_vm14 = vcmp.lt.s32.totalorder %v2100_v34, 50 }
  0x2e   :  { %355 = vmatpush1.bf16.msra.mxu0 %v1872_v23  ;;  %1726 = vmatpush3.bf16.msra.mxu1 %v1873_v24  ;;  %v726_v53 = vsel %vm79_vm12, 1, %v1986_v0  ;;  %v725_v54 = vsel %vm78_vm13, 1, %v1986_v0  ;;  %vm80_vm15 = vcmp.lt.s32.totalorder %v2105_v35, 50  ;;  %v728_v55 = vsel %vm81_vm14, 1, %v1986_v0  ;;  %v1895_v23 = vld [vmem:[#allocation5 + $0x60] sm:$0xff]   ;;  %v1896_v24 = vld [vmem:[#allocation5 + $0x28] sm:$0xff]  }
  0x2f   :  { %112 = vperm.xlu1 %1857, %v2061_v15   ;;  %356 = vmatprep.subr.bf16.mxu0 %v1874_v27  ;;  %v727_v56 = vsel %vm80_vm15, 1, %v1986_v0  ;;  %v83_v60 = vand.u32 127, %v82_v57  ;;  %v1987_v1 = vmov 1.0|1.0   ;;  %v1900_v27 = vld [vmem:[#allocation5 + $0x18] sm:$0xff]  }
  0x30   :  { %109 = vperm.xlu0 %1856, %v2066_v17   ;;  %1727 = vmatprep.subr.bf16.mxu1 %v1877_v33 }
  0x32   :  { %357 = vmatpush1.bf16.msra.mxu0 %v1876_v32  ;;  %1728 = vmatpush3.bf16.msra.mxu1 %v1877_v33  ;;  %v2185_v32 = vld [vmem:[#allocation5 + $0xb8] sm:$0xff]   ;;  %v1906_v33 = vld [vmem:[#allocation5] sm:$0xff]  }
  0x33   :  { %118 = vperm.xlu1 %1857, %v2071_v20   ;;  %358 = vmatprep.subr.bf16.mxu0 %v1878_v38  ;;  %v1892_v20 = vld [vmem:[#allocation5 + $0x70] sm:$0xff]  }
  0x34   :  { %115 = vperm.xlu0 %1856, %v2078_v22   ;;  %1729 = vmatprep.subr.bf16.mxu1 %v1881_v40  ;;  %v1894_v22 = vld [vmem:[#allocation5 + $0x68] sm:$0xff]  }
  0x36   :  { %359 = vmatpush1.bf16.msra.mxu0 %v1880_v39  ;;  %1730 = vmatpush3.bf16.msra.mxu1 %v1881_v40 }
  0x37   :  { %124 = vperm.xlu1 %1857, %v2087_v28   ;;  %360 = vmatprep.subr.bf16.mxu0 %v1882_v41  ;;  %v1901_v28 = vld [vmem:[#allocation5 + $0x48] sm:$0xff]  }
  0x38   :  { %121 = vperm.xlu0 %1856, %v2092_v29   ;;  %1731 = vmatprep.subr.bf16.mxu1 %v1885_v43  ;;  %v1902_v29 = vld [vmem:[#allocation5 + $0x10] sm:$0xff]  }
  0x3a   :  { %361 = vmatpush1.bf16.msra.mxu0 %v1884_v42  ;;  %1732 = vmatpush3.bf16.msra.mxu1 %v1885_v43 }
  0x3b   :  { %130 = vperm.xlu1 %1857, %v2100_v34   ;;  %362 = vmatprep.subr.bf16.mxu0 %v1886_v44 }
  0x3c   :  { %127 = vperm.xlu0 %1856, %v2105_v35   ;;  %1733 = vmatprep.subr.bf16.mxu1 %v1889_v46 }
  0x3e   :  { %363 = vmatpush1.bf16.msra.mxu0 %v1888_v45  ;;  %1734 = vmatpush3.bf16.msra.mxu1 %v1889_v46 }
  0x3f   :  { %733 = vperm.xlu1 %1857, %v714_v30   ;;  %1751 = vmatprep.subr.bf16.mxu1 %v1891_v18  ;;  %v1903_v30 = vld [vmem:[#allocation5 + $0x40] sm:$0xff]  }
  0x40   :  { %730 = vperm.xlu0 %1856, %v713_v25   ;;  %1783 = vmatprep.subr.bf16.mxu0 %v1890_v19  ;;  %v1898_v25 = vld [vmem:[#allocation5 + $0x20] sm:$0xff]  }
  0x43   :  { %739 = vperm.xlu1 %1857, %v716_v26   ;;  %v1899_v26 = vld [vmem:[#allocation5 + $0x50] sm:$0xff]  }
  0x44   :  { %736 = vperm.xlu0 %1856, %v715_v31   ;;  %v1904_v31 = vld [vmem:[#allocation5 + $0x8] sm:$0xff]  }
  0x47   :  { %745 = vperm.xlu1 %1857, %v718_v36  }
  0x48   :  { %742 = vperm.xlu0 %1856, %v717_v37  }
  0x4b   :  { %751 = vperm.xlu1 %1857, %v720_v47  }
  0x4c   :  { %748 = vperm.xlu0 %1856, %v719_v48  }
  0x4f   :  { %757 = vperm.xlu1 %1857, %v722_v49  }
  0x50   :  { %754 = vperm.xlu0 %1856, %v721_v50  }
  0x53   :  { %763 = vperm.xlu1 %1857, %v724_v51  }
  0x54   :  { %760 = vperm.xlu0 %1856, %v723_v52  }
  0x57   :  { %769 = vperm.xlu1 %1857, %v726_v53  }
  0x58   :  { %766 = vperm.xlu0 %1856, %v725_v54  }
  0x5b   :  { %775 = vperm.xlu1 %1857, %v728_v55   ;;  %v2211_v55 = vshrl.u32 %v82_v57, 7 }
  0x5c   :  { %772 = vperm.xlu0 %1856, %v727_v56  }
  0x9a   :  { %v92_v58 = vpop.permute.xlu1 %91 }
  0x9b   :  { %v86_v59 = vpop.permute.xlu0 %85  ;;  %vm134_vm0 = vcmp.eq.s32.totalorder %v92_v58, %v83_v60 }
  0x9c   :  { %vm132_vm3 = vcmp.eq.s32.totalorder %v86_v59, %v83_v60 }
  0x9e   :  { %v95_v61 = vpop.permute.xlu1 %94 }
  0x9f   :  { %v89_v62 = vpop.permute.xlu0 %88  ;;  %vm135_vm1 = vcmp.eq.s32.totalorder %v95_v61, %v83_v60 }
  0xa0   :  { %vm133_vm2 = vcmp.eq.s32.totalorder %v89_v62, %v83_v60  ;;  %vm2138_vm4 = vmpackc.low %vm135_vm1, %vm134_vm0 }
  0xa1   :  { %vm1573_vm5 = vmpackc.low %vm133_vm2, %vm132_vm3 }
  0xa2   :  { %1574 = vmatmul.mubr.msk.bf16.vlgmr.msra.gmra.mxu0 %vm1573_vm5, %v1987_v1  ;;  %1735 = vmatprep.mubr.msk.bf16.mxu1 %vm1573_vm5, %v1987_v1  ;;  %v101_v2 = vpop.permute.xlu1 %100 }
  0xa3   :  { %v98_v3 = vpop.permute.xlu0 %97  ;;  %vm137_vm6 = vcmp.eq.s32.totalorder %v101_v2, %v83_v60  ;;  %1736 = vmatmul.mubr.msk.bf16.vlgmr.msra.gmra.mxu1 %vm2138_vm4, %v1987_v1  ;;  %390 = vmatprep.mubr.bf16.mxu0 %v1986_v0 }
  0xa4   :  { %vm136_vm7 = vcmp.eq.s32.totalorder %v98_v3, %v83_v60  ;;  %1752 = vmatpush3.bf16.msra.mxu1 %v1891_v18  ;;  %1784 = vmatpush3.bf16.msra.mxu0 %v1890_v19 }
  0xa5   :  { %vm2145_vm8 = vmpackc.low %vm137_vm6, %vm136_vm7  ;;  %1753 = vmatprep.subr.bf16.mxu1 %v1892_v20  ;;  %1785 = vmatprep.subr.bf16.mxu0 %v1893_v21 }
  0xa6   :  { %1739 = vmatprep.mubr.msk.bf16.mxu1 %vm2145_vm8, %v1987_v1  ;;  %v107_v5 = vpop.permute.xlu1 %106 }
  0xa7   :  { %v104_v6 = vpop.permute.xlu0 %103  ;;  %vm139_vm9 = vcmp.eq.s32.totalorder %v107_v5, %v83_v60 }
  0xa8   :  { %vm138_vm10 = vcmp.eq.s32.totalorder %v104_v6, %v83_v60  ;;  %1754 = vmatpush3.bf16.msra.mxu1 %v1892_v20  ;;  %1786 = vmatpush3.bf16.msra.mxu0 %v1893_v21 }
  0xa9   :  { %vm2151_vm11 = vmpackc.low %vm139_vm9, %vm138_vm10  ;;  %1755 = vmatprep.subr.bf16.mxu1 %v1894_v22  ;;  %1787 = vmatprep.subr.bf16.mxu0 %v1896_v24  ;;  %vm641_vm9 = vcmp.lt.s32.totalorder %v2211_v55, 7 }
  0xaa   :  { %1576 = vmatmul.mubr.msk.bf16.gmra.mxu0 %vm2138_vm4, %v1987_v1  ;;  %v113_v8 = vpop.permute.xlu1 %112 }
  0xab   :  { %v110_v9 = vpop.permute.xlu0 %109  ;;  %vm141_vm12 = vcmp.eq.s32.totalorder %v113_v8, %v83_v60  ;;  %1740 = vmatmul.mubr.msk.bf16.gmra.mxu1 %vm2151_vm11, %v1987_v1  ;;  %400 = vmatprep.mubr.bf16.mxu0 %v1986_v0 }
  0xac   :  { %vm140_vm13 = vcmp.eq.s32.totalorder %v110_v9, %v83_v60  ;;  %1756 = vmatpush3.bf16.msra.mxu1 %v1894_v22  ;;  %1788 = vmatpush3.bf16.msra.mxu0 %v1896_v24 }
  0xad   :  { %vm2160_vm14 = vmpackc.low %vm141_vm12, %vm140_vm13  ;;  %1757 = vmatprep.subr.bf16.mxu1 %v1895_v23  ;;  %1789 = vmatprep.subr.bf16.mxu0 %v1898_v25 }
  0xae   :  { %1743 = vmatprep.mubr.msk.bf16.mxu1 %vm2160_vm14, %v1987_v1  ;;  %v119_v11 = vpop.permute.xlu1 %118 }
  0xaf   :  { %v116_v12 = vpop.permute.xlu0 %115  ;;  %vm143_vm15 = vcmp.eq.s32.totalorder %v119_v11, %v83_v60 }
  0xb0   :  { %vm142_vm0 = vcmp.eq.s32.totalorder %v116_v12, %v83_v60  ;;  %1758 = vmatpush3.bf16.msra.mxu1 %v1895_v23  ;;  %1790 = vmatpush3.bf16.msra.mxu0 %v1898_v25 }
  0xb1   :  { %vm2166_vm1 = vmpackc.low %vm143_vm15, %vm142_vm0  ;;  %1791 = vmatprep.subr.bf16.mxu0 %v1900_v27 }
  0xb2   :  { %1578 = vmatmul.mubr.msk.bf16.gmra.mxu0 %vm2145_vm8, %v1987_v1  ;;  %v125_v14 = vpop.permute.xlu1 %124  ;;  %vm576_vm8 = vcmp.lt.s32.totalorder %v2211_v55, 1 }
  0xb3   :  { %v122_v15 = vpop.permute.xlu0 %121  ;;  %vm145_vm2 = vcmp.eq.s32.totalorder %v125_v14, %v83_v60  ;;  %1744 = vmatmul.mubr.msk.bf16.gmra.mxu1 %vm2166_vm1, %v1987_v1  ;;  %410 = vmatprep.mubr.bf16.mxu0 %v1986_v0 }
  0xb4   :  { %vm144_vm3 = vcmp.eq.s32.totalorder %v122_v15, %v83_v60  ;;  %1792 = vmatpush3.bf16.msra.mxu0 %v1900_v27 }
  0xb5   :  { %vm1585_vm4 = vmpackc.low %vm145_vm2, %vm144_vm3  ;;  %1793 = vmatprep.subr.bf16.mxu0 %v1902_v29 }
  0xb6   :  { %1747 = vmatprep.mubr.msk.bf16.mxu1 %vm1585_vm4, %v1987_v1  ;;  %v131_v16 = vpop.permute.xlu1 %130 }
  0xb7   :  { %v128_v17 = vpop.permute.xlu0 %127  ;;  %vm147_vm5 = vcmp.eq.s32.totalorder %v131_v16, %v83_v60 }
  0xb8   :  { %vm146_vm6 = vcmp.eq.s32.totalorder %v128_v17, %v83_v60  ;;  %1794 = vmatpush3.bf16.msra.mxu0 %v1902_v29 }
  0xb9   :  { %vm1587_vm7 = vmpackc.low %vm147_vm5, %vm146_vm6  ;;  %1795 = vmatprep.subr.bf16.mxu0 %v1904_v31 }
  0xba   :  { %1580 = vmatmul.mubr.msk.bf16.gmra.mxu0 %vm2151_vm11, %v1987_v1  ;;  %v2198_v48 = vpop.permute.xlu1 %733 }
  0xbb   :  { %1748 = vmatmul.mubr.msk.bf16.gmra.mxu1 %vm1587_vm7, %v1987_v1  ;;  %420 = vmatprep.mubr.bf16.mxu0 %v1986_v0  ;;  %v2258_v24 = vpop.permute.xlu0 %730  ;;  %vm778_vm11 = vcmp.eq.s32.totalorder %v2198_v48, 1 }
  0xbc   :  { %1796 = vmatpush3.bf16.msra.mxu0 %v1904_v31  ;;  %vm777_vm15 = vcmp.eq.s32.totalorder %v2258_v24, 1 }
  0xbd   :  { %1797 = vmatprep.subr.bf16.mxu0 %v1906_v33  ;;  %vm1614_vm5 = vmpackc.low %vm778_vm11, %vm777_vm15 }
  0xbe   :  { %v2208_v54 = vpop.permute.xlu1 %739 }
  0xbf   :  { %vm780_vm12 = vcmp.eq.s32.totalorder %v2208_v54, 1 }
  0xc0   :  { %1798 = vmatpush3.bf16.msra.mxu0 %v1906_v33 }
  0xc2   :  { %1582 = vmatmul.mubr.msk.bf16.gmra.mxu0 %vm2160_vm14, %v1987_v1 }
  0xc3   :  { %430 = vmatprep.mubr.bf16.mxu0 %v1986_v0 }
  0xca   :  { %1584 = vmatmul.mubr.msk.bf16.gmra.mxu0 %vm2166_vm1, %v1987_v1 }
  0xcb   :  { %440 = vmatprep.mubr.bf16.mxu0 %v1986_v0 }
  0xd2   :  { %1586 = vmatmul.mubr.msk.bf16.gmra.mxu0 %vm1585_vm4, %v1987_v1 }
  0xd3   :  { %450 = vmatprep.mubr.bf16.mxu0 %v1986_v0  ;;  %v1897_v0 = vld [vmem:[#allocation5 + $0x58] sm:$0xff]  }
  0xd4   :  { %1759 = vmatprep.subr.bf16.mxu1 %v1897_v0 }
  0xd5   :  { %1760 = vmatpush3.bf16.msra.mxu1 %v1897_v0 }
  0xd6   :  { %1761 = vmatprep.subr.bf16.mxu1 %v1899_v26 }
  0xd9   :  { %1762 = vmatpush3.bf16.msra.mxu1 %v1899_v26 }
  0xda   :  { %1588 = vmatmul.mubr.msk.bf16.gmra.mxu0 %vm1587_vm7, %v1987_v1  ;;  %1763 = vmatprep.subr.bf16.mxu1 %v1901_v28  ;;  %v2222_v1 = vpop.permute.xlu1 %745 }
  0xdb   :  { %vm2829_vm14 = vcmp.eq.s32.totalorder %v2222_v1, 1 }
  0xdd   :  { %1764 = vmatpush3.bf16.msra.mxu1 %v1901_v28 }
  0xde   :  { %1765 = vmatprep.subr.bf16.mxu1 %v1903_v30  ;;  %v2246_v18 = vpop.permute.xlu1 %751 }
  0xdf   :  { %vm784_vm1 = vcmp.eq.s32.totalorder %v2246_v18, 1 }
  0xe1   :  { %1766 = vmatpush3.bf16.msra.mxu1 %v1903_v30  ;;  %v2270_v30 = vld [vmem:[%s2815_s2] ss:$0 sm:$0xff] }
  0xe2   :  { %1815 = vmatprep.subr.bf16.mxu1 %v2185_v32 }
 0x162   :  { %v2188_v34 = vpop.f32.mrf.mxu0 }
 0x163   :  { %v1737_v36 = vpop.f32.mrf.mxu1  ;;  %v2824_v2 = vrot.slane %v2188_v34, 7 }
 0x164   :  { %v2190_v35 = vpop.f32.mrf.mxu0  ;;  %v627_v4 = vrot.slane %v1737_v36, 1 }
 0x165   :  { %v2192_v39 = vpop.f32.mrf.mxu1 }
 0x166   :  { %v386_v37 = vpop.f32.mrf.mxu0 }
 0x167   :  { %v1738_v42 = vpop.f32.mrf.mxu1  ;;  %v559_v61 = vrot.slane %v386_v37, 7  ;;  %v2275_v37 = vpop.permute.xlu1 %757 }
 0x168   :  { %v388_v38 = vpop.f32.mrf.mxu0  ;;  %v628_v6 = vrot.slane %v1738_v42, 1  ;;  %vm2830_vm2 = vcmp.eq.s32.totalorder %v2275_v37, 1 }
 0x169   :  { %v2194_v45 = vpop.f32.mrf.mxu1  ;;  %v591_v7 = vsel %vm576_vm8, %v2824_v2, %v559_v61 }
 0x16a   :  { %v392_v40 = vpop.f32.mrf.mxu0  ;;  %v626_v8 = vrot.slane %v2194_v45, 1  ;;  %v610_v15 = vadd.f32 %v591_v7, %v388_v38  ;;  %v654_v20 = vsel %vm641_vm9, %v627_v4, %v628_v6 }
 0x16b   :  { %v2200_v49 = vpop.f32.mrf.mxu1  ;;  %v560_v58 = vrot.slane %v392_v40, 7 }
 0x16c   :  { %v394_v41 = vpop.f32.mrf.mxu0  ;;  %v655_v19 = vsel %vm641_vm9, %v626_v8, %v627_v4  ;;  %v2300_v4 = vpop.permute.xlu1 %763  ;;  %v631_v7 = vrot.slane %v2200_v49, 1 }
 0x16d   :  { %v511_v52 = vpop.f32.mrf.mxu1  ;;  %v590_v57 = vsel %vm576_vm8, %v559_v61, %v560_v58  ;;  %v659_v26 = vadd.f32 %v655_v19, %v610_v15  ;;  %2843 = vst [vmem:[#allocation11_spill] sm:$0xff] %v2300_v4  ;;  %v2820_v15 = vrot.slane %v2192_v39, 1 }
 0x16e   :  { %v396_v43 = vpop.f32.mrf.mxu0  ;;  %v611_v10 = vadd.f32 %v590_v57, %v394_v41  ;;  %v629_v13 = vrot.slane %v511_v52, 1 }
 0x16f   :  { %v2215_v59 = vpop.f32.mrf.mxu1  ;;  %v561_v62 = vrot.slane %v396_v43, 7  ;;  %v2281_v41 = vadd.f32 %v2270_v30, %v659_v26 }
 0x170   :  { %v398_v44 = vpop.f32.mrf.mxu0  ;;  %v660_v21 = vadd.f32 %v654_v20, %v611_v10  ;;  %v653_v0 = vsel %vm641_vm9, %v628_v6, %v629_v13 }
 0x171   :  { %v2227_v3 = vpop.f32.mrf.mxu1  ;;  %v589_v9 = vsel %vm576_vm8, %v560_v58, %v561_v62 }
 0x172   :  { %v2196_v46 = vpop.f32.mrf.mxu0  ;;  %v612_v16 = vadd.f32 %v589_v9, %v398_v44  ;;  %v630_v28 = vrot.slane %v2227_v3, 1  ;;  %v683_v33 = vadd.f32 %v2270_v30, %v660_v21 }
 0x173   :  { %v562_v11 = vrot.slane %v2196_v46, 7  ;;  %v2242_v14 = vpop.f32.mrf.mxu1  ;;  %v2288_v46 = vpop.permute.xlu0 %736 }
 0x174   :  { %v404_v47 = vpop.f32.mrf.mxu0  ;;  %v661_v27 = vadd.f32 %v653_v0, %v612_v16  ;;  %v652_v43 = vsel %vm641_vm9, %v629_v13, %v630_v28  ;;  %v699_v52 = vmax.f32 %v683_v33, 0.0  ;;  %vm779_vm10 = vcmp.eq.s32.totalorder %v2288_v46, 1 }
 0x175   :  { %v588_v22 = vsel %vm576_vm8, %v561_v62, %v562_v11  ;;  %v2262_v25 = vpop.f32.mrf.mxu1  ;;  %v2819_v62 = vmax.f32 %v2281_v41, 0.0  ;;  %v632_v16 = vrot.slane %v2215_v59, 1  ;;  %vm1617_vm6 = vmpackc.low %vm780_vm12, %vm779_vm10 }
 0x176   :  { %v2202_v50 = vpop.f32.mrf.mxu0  ;;  %v613_v31 = vadd.f32 %v588_v22, %v404_v47  ;;  %v684_v42 = vadd.f32 %v2270_v30, %v661_v27  ;;  %v2308_v9 = vsel %vm779_vm10, %v699_v52, 0.0  ;;  %v633_v26 = vrot.slane %v2262_v25, 1 }
 0x177   :  { %v563_v38 = vrot.slane %v2202_v50, 7  ;;  %v2278_v40 = vpop.f32.mrf.mxu1  ;;  %2844 = vst [vmem:[#allocation12_spill] sm:$0xff] %v2308_v9  ;;  %v2315_v13 = vpop.permute.xlu0 %742  ;;  %v2334_v22 = vsel %vm778_vm11, %v2819_v62, 0.0  ;;  %v811_v59 = vrot.slane %v2308_v9, 7 }
 0x178   :  { %v2204_v51 = vpop.f32.mrf.mxu0  ;;  %v662_v47 = vadd.f32 %v652_v43, %v613_v31  ;;  %v700_v57 = vmax.f32 %v684_v42, 0.0  ;;  %vm781_vm13 = vcmp.eq.s32.totalorder %v2315_v13, 1  ;;  %v2352_v42 = vpop.permute.xlu1 %769 }
 0x179   :  { %v587_v50 = vsel %vm576_vm8, %v562_v11, %v563_v38  ;;  %v2294_v61 = vpop.f32.mrf.mxu1  ;;  %2845 = vst [vmem:[#allocation13_spill] sm:$0xff] %v2352_v42  ;;  %vm1620_vm7 = vmpackc.low %vm2829_vm14, %vm781_vm13 }
 0x17a   :  { %v2206_v53 = vpop.f32.mrf.mxu0  ;;  %v2303_v6 = vadd.f32 %v2270_v30, %v662_v47  ;;  %v614_v10 = vadd.f32 %v587_v50, %v2204_v51  ;;  %v2323_v49 = vsel %vm780_vm12, %v700_v57, 0.0  ;;  %v651_v51 = vsel %vm641_vm9, %v630_v28, %v631_v7 }
 0x17b   :  { %v2319_v19 = vpop.f32.mrf.mxu1  ;;  %v564_v20 = vrot.slane %v2206_v53, 7  ;;  %v2347_v53 = vsel %vm641_vm9, %v2820_v15, %v626_v8  ;;  %v2825_v25 = vrot.slane %v2323_v49, 7  ;;  %v634_v43 = vrot.slane %v2294_v61, 1 }
 0x17c   :  { %v2213_v56 = vpop.f32.mrf.mxu0  ;;  %v2821_v0 = vmax.f32 %v2303_v6, 0.0  ;;  %v663_v28 = vadd.f32 %v651_v51, %v614_v10  ;;  %v2822_v47 = vrot.slane %v2334_v22, 7  ;;  %v635_v8 = vrot.slane %v2242_v14, 1 }
 0x17d   :  { %v2357_v45 = vpop.f32.mrf.mxu1  ;;  %v586_v50 = vsel %vm576_vm8, %v563_v38, %v564_v20  ;;  %v650_v10 = vsel %vm641_vm9, %v631_v7, %v632_v16  ;;  %v649_v38 = vsel %vm641_vm9, %v632_v16, %v633_v26  ;;  %v2385_v61 = vpack.c.bf16 %v700_v57, %v699_v52 }
 0x17e   :  { %v2217_v60 = vpop.f32.mrf.mxu0  ;;  %v686_v7 = vadd.f32 %v2270_v30, %v663_v28  ;;  %v2399_v16 = vsel %vm576_vm8, %v811_v59, %v2825_v25  ;;  %v615_v52 = vadd.f32 %v586_v50, %v2213_v56  ;;  %v648_v28 = vsel %vm641_vm9, %v633_v26, %v634_v43  ;;  %v2415_v56 = vpop.permute.xlu0 %748 }
 0x17f   :  { %v565_v27 = vrot.slane %v2217_v60, 7  ;;  %v636_v60 = vrot.slane %v2278_v40, 1  ;;  %v2373_v40 = vsel %vm781_vm13, %v2821_v0, 0.0  ;;  %v2402_v57 = vpop.f32.mrf.mxu1  ;;  %v2417_v50 = vpop.permute.xlu1 %775  ;;  %vm783_vm3 = vcmp.eq.s32.totalorder %v2415_v56, 1 }
 0x180   :  { %v2220_v63 = vpop.f32.mrf.mxu0  ;;  %v702_v15 = vmax.f32 %v686_v7, 0.0  ;;  %vm792_vm0 = vcmp.eq.s32.totalorder %v2417_v50, 1 }
 0x181   :  { %v585_v14 = vsel %vm576_vm8, %v564_v20, %v565_v27 }
 0x182   :  { %v2229_v5 = vpop.f32.mrf.mxu0  ;;  %v616_v2 = vadd.f32 %v585_v14, %v2220_v63 }
 0x183   :  { %v566_v51 = vrot.slane %v2229_v5, 7  ;;  %v2383_v5 = vsel %vm576_vm8, %v2822_v47, %v811_v59  ;;  %v2408_v47 = vsel %vm641_vm9, %v635_v8, %v636_v60 }
 0x184   :  { %v2240_v12 = vpop.f32.mrf.mxu0 }
 0x185   :  { %v584_v59 = vsel %vm576_vm8, %v565_v27, %v566_v51  ;;  %v647_v27 = vsel %vm641_vm9, %v634_v43, %v635_v8  ;;  %v664_v43 = vadd.f32 %v650_v10, %v615_v52  ;;  %v665_v8 = vadd.f32 %v649_v38, %v616_v2 }
 0x186   :  { %v2244_v17 = vpop.f32.mrf.mxu0  ;;  %v2849_v10 = vrot.slane %v2192_v39, 1  ;;  %v2850_v38 = vrot.slane %v2402_v57, 1 }
 0x187   :  { %v2823_v31 = vrot.slane %v2244_v17, 7  ;;  %v2470_v39 = vadd.f32 %v2270_v30, %v665_v8 }
 0x188   :  { %v2256_v23 = vpop.f32.mrf.mxu0  ;;  %v657_v52 = vsel %vm641_vm9, %v2850_v38, %v2849_v10  ;;  %v1907_v10 = vld [vmem:[#allocation5 + $0xb0] sm:$0xff]  }
 0x189   :  { %v583_v20 = vsel %vm576_vm8, %v566_v51, %v2823_v31  ;;  %v617_v31 = vadd.f32 %v584_v59, %v2240_v12  ;;  %v2847_v59 = vrot.slane %v2357_v45, 1 }
 0x18a   :  { %v2265_v29 = vpop.f32.mrf.mxu0  ;;  %v618_v26 = vadd.f32 %v583_v20, %v2256_v23  ;;  %v546_v20 = vpop.f32.mrf.mxu1 }
 0x18b   :  { %v568_v23 = vrot.slane %v2265_v29, 7 }
 0x18c   :  { %v2273_v36 = vpop.f32.mrf.mxu0  ;;  %v667_v29 = vadd.f32 %v647_v27, %v618_v26  ;;  %v638_v26 = vrot.slane %v546_v20, 1  ;;  %v666_v27 = vadd.f32 %v648_v28, %v617_v31  ;;  %v2853_v20 = vrot.slane %v2319_v19, 1 }
 0x18e   :  { %v2286_v44 = vpop.f32.mrf.mxu0  ;;  %v2480_v28 = vadd.f32 %v2270_v30, %v667_v29 }
 0x18f   :  { %v569_v9 = vrot.slane %v2286_v44, 7  ;;  %v2846_v44 = vrot.slane %v2188_v34, 7 }
 0x190   :  { %v2290_v58 = vpop.f32.mrf.mxu0 }
 0x191   :  { %v581_v34 = vsel %vm576_vm8, %v568_v23, %v569_v9 }
 0x192   :  { %v2297_v3 = vpop.f32.mrf.mxu0 }
 0x193   :  { %v570_v63 = vrot.slane %v2297_v3, 7 }
 0x194   :  { %v2311_v11 = vpop.f32.mrf.mxu0 }
 0x196   :  { %v2328_v21 = vpop.f32.mrf.mxu0 }
 0x197   :  { %v2848_v2 = vrot.slane %v2328_v21, 7 }
 0x198   :  { %v2350_v33 = vpop.f32.mrf.mxu0 }
 0x199   :  { %v579_v3 = vsel %vm576_vm8, %v570_v63, %v2848_v2 }
 0x19a   :  { %v2366_v62 = vpop.f32.mrf.mxu0 }
 0x19b   :  { %v572_v42 = vrot.slane %v2366_v62, 7 }
 0x19c   :  { %v2393_v0 = vpop.f32.mrf.mxu0 }
 0x19e   :  { %v456_v25 = vpop.f32.mrf.mxu0 }
 0x19f   :  { %v573_v4 = vrot.slane %v456_v25, 7 }
 0x1a0   :  { %v458_v14 = vpop.f32.mrf.mxu0 }
 0x1a1   :  { %v592_v25 = vsel %vm576_vm8, %v573_v4, %v2846_v44  ;;  %v577_v7 = vsel %vm576_vm8, %v572_v42, %v573_v4  ;;  %v645_v44 = vsel %vm641_vm9, %v636_v60, %v2847_v59  ;;  %v2448_v4 = vsel %vm2829_vm14, %v702_v15, 0.0  ;;  %v2462_v60 = vpop.permute.xlu0 %754 }
 0x1a2   :  { %v609_v12 = vadd.f32 %v592_v25, %v2190_v35  ;;  %v624_v51 = vadd.f32 %v577_v7, %v458_v14  ;;  %v2851_v14 = vrot.slane %v2244_v17, 7  ;;  %v2852_v17 = vmax.f32 %v2303_v6, 0.0 }
 0x1a3   :  { %vm2831_vm4 = vcmp.eq.s32.totalorder %v2462_v60, 1  ;;  %v2491_v6 = vadd.f32 %v2270_v30, %v666_v27  ;;  %v2855_v27 = vrot.slane %v2357_v45, 1 }
 0x1a4   :  { %v658_v35 = vadd.f32 %v2347_v53, %v609_v12  ;;  %v582_v25 = vsel %vm576_vm8, %v2851_v14, %v568_v23  ;;  %v673_v7 = vadd.f32 %v657_v52, %v624_v51  ;;  %v620_v53 = vadd.f32 %v581_v34, %v2290_v58 }
 0x1a5   :  { %v580_v12 = vsel %vm576_vm8, %v569_v9, %v570_v63  ;;  %v1621_v31 = vpack.c.bf16 %v702_v15, %v2852_v17  ;;  %v622_v51 = vadd.f32 %v579_v3, %v2350_v33  ;;  %v814_v58 = vrot.slane %v2448_v4, 7 }
 0x1a6   :  { %v681_v59 = vadd.f32 %v2270_v30, %v658_v35  ;;  %v2484_v23 = vadd.f32 %v2270_v30, %v673_v7  ;;  %v687_v9 = vadd.f32 %v2270_v30, %v664_v43  ;;  %v619_v63 = vadd.f32 %v582_v25, %v2273_v36 }
 0x1a7   :  { %v621_v15 = vadd.f32 %v580_v12, %v2311_v11  ;;  %v643_v33 = vsel %vm641_vm9, %v638_v26, %v2853_v20  ;;  %v704_v34 = vmax.f32 %v2470_v39, 0.0  ;;  %v669_v2 = vadd.f32 %v645_v44, %v620_v53  ;;  %v2544_v12 = vpop.permute.xlu0 %760 }
 0x1a8   :  { %v697_v8 = vmax.f32 %v681_v59, 0.0  ;;  %v712_v29 = vmax.f32 %v2484_v23, 0.0  ;;  %v2854_v43 = vmax.f32 %v2281_v41, 0.0  ;;  %v706_v11 = vmax.f32 %v2480_v28, 0.0 }
 0x1a9   :  { %v671_v35 = vadd.f32 %v643_v33, %v622_v51  ;;  %v703_v38 = vmax.f32 %v687_v9, 0.0  ;;  %v668_v52 = vadd.f32 %v2408_v47, %v619_v63  ;;  %v644_v14 = vsel %vm641_vm9, %v2855_v27, %v638_v26  ;;  %v1908_v51 = vld [vmem:[#allocation5 + $0xa8] sm:$0xff]  }
 0x1aa   :  { %v1615_v3 = vpack.c.bf16 %v2854_v43, %v697_v8  ;;  %v2504_v36 = vsel %vm777_vm15, %v697_v8, 0.0  ;;  %v2515_v44 = vsel %vm792_vm0, %v712_v29, 0.0  ;;  %v705_v7 = vmax.f32 %v2491_v6, 0.0 }
 0x1ab   :  { %v809_v41 = vrot.slane %v2504_v36, 7  ;;  %v824_v25 = vrot.slane %v2515_v44, 7  ;;  %v670_v39 = vadd.f32 %v644_v14, %v621_v15  ;;  %v2856_v47 = vrot.slane %v2328_v21, 7 }
 0x1ac   :  { %1767 = vmatprep.mubr.msk.bf16.mxu1 %vm1614_vm5, %v1615_v3  ;;  %v2857_v26 = vrot.slane %v2334_v22, 7  ;;  %v2548_v59 = vsel %vm784_vm1, %v704_v34, 0.0  ;;  %v2551_v62 = vadd.f32 %v2270_v30, %v669_v2  ;;  %v2566_v17 = vsel %vm2830_vm2, %v706_v11, 0.0  ;;  %vm1623_vm5 = vmpackc.low %vm784_vm1, %vm783_vm3 }
 0x1ad   :  { %v578_v45 = vsel %vm576_vm8, %v2856_v47, %v572_v42  ;;  %1768 = vmatmul.mubr.msk.bf16.vlgmr.msra.gmra.mxu1 %vm1617_vm6, %v2385_v61  ;;  %v840_v21 = vsel %vm576_vm8, %v824_v25, %v809_v41  ;;  %v2858_v42 = vrot.slane %v2373_v40, 7  ;;  %v2569_v28 = vadd.f32 %v2270_v30, %v671_v35  ;;  %vm1626_vm6 = vmpackc.low %vm2830_vm2, %vm2831_vm4 }
 0x1ae   :  { %v839_v53 = vsel %vm576_vm8, %v809_v41, %v2857_v26  ;;  %1816 = vmatpush3.bf16.msra.mxu1 %v2185_v32  ;;  %1771 = vmatprep.mubr.msk.bf16.mxu1 %vm1620_vm7, %v1621_v31  ;;  %v842_v31 = vpack.c.bf16 %v2399_v16, %v2383_v5  ;;  %v2575_v9 = vsel %vm783_vm3, %v703_v38, 0.0  ;;  %v691_v63 = vadd.f32 %v2270_v30, %v668_v52 }
 0x1af   :  { %v835_v61 = vsel %vm576_vm8, %v2858_v42, %v814_v58  ;;  %v841_v32 = vpack.c.bf16 %v839_v53, %v840_v21  ;;  %1817 = vmatprep.subr.bf16.mxu1 %v1907_v10  ;;  %v623_v8 = vadd.f32 %v578_v45, %v2393_v0  ;;  %v2859_v6 = vmov %v2858_v42  ;;  %v2864_v53 = vld [vmem:[#allocation13_spill] sm:$0xff] }
 0x1b0   :  { %v2860_v15 = vrot.slane %v2323_v49, 7  ;;  %v816_v33 = vrot.slane %v2548_v59, 7  ;;  %v2588_v5 = vsel %vm2831_vm4, %v705_v7, 0.0  ;;  %v693_v16 = vadd.f32 %v2270_v30, %v670_v39  ;;  %v1909_v39 = vld [vmem:[#allocation5 + $0xa0] sm:$0xff]   ;;  %v1910_v42 = vld [vmem:[#allocation5 + $0x98] sm:$0xff]  }
 0x1b1   :  { %1799 = vmatprep.mubr.bf16.mxu0 %v841_v32  ;;  %v818_v43 = vrot.slane %v2566_v17, 7  ;;  %v708_v0 = vmax.f32 %v2551_v62, 0.0  ;;  %v815_v3 = vrot.slane %v2575_v9, 7  ;;  %v1624_v35 = vpack.c.bf16 %v704_v34, %v703_v38 }
 0x1b2   :  { %v836_v20 = vsel %vm576_vm8, %v2860_v15, %v2859_v6  ;;  %1800 = vmatmul.mubr.bf16.vlgmr.msra.gmra.mxu0 %v842_v31  ;;  %1818 = vmatpush3.bf16.msra.mxu1 %v1907_v10  ;;  %v710_v41 = vmax.f32 %v2569_v28, 0.0  ;;  %v2861_v52 = vrot.slane %v2402_v57, 1  ;;  %v2862_v27 = vrot.slane %v2319_v19, 1  ;;  %v2605_v10 = vpop.permute.xlu0 %766  ;;  %v2863_v19 = vld [vmem:[#allocation11_spill] sm:$0xff] }
 0x1b3   :  { %v843_v2 = vpack.c.bf16 %v835_v61, %v836_v20  ;;  %1819 = vmatprep.subr.bf16.mxu1 %v1908_v51  ;;  %v817_v34 = vrot.slane %v2588_v5, 7  ;;  %v1627_v38 = vpack.c.bf16 %v706_v11, %v705_v7  ;;  %v707_v47 = vmax.f32 %v691_v63, 0.0 }
 0x1b4   :  { %v642_v14 = vsel %vm641_vm9, %v2862_v27, %v2861_v52  ;;  %vm2832_vm7 = vcmp.eq.s32.totalorder %v2863_v19, 1  ;;  %v709_v45 = vmax.f32 %v693_v16, 0.0  ;;  %v833_v26 = vsel %vm576_vm8, %v815_v3, %v816_v33 }
 0x1b5   :  { %1803 = vmatprep.mubr.bf16.mxu0 %v843_v2  ;;  %v672_v57 = vadd.f32 %v642_v14, %v623_v8  ;;  %1772 = vmatmul.mubr.msk.bf16.gmra.mxu1 %vm1623_vm5, %v1624_v35  ;;  %vm790_vm14 = vcmp.eq.s32.totalorder %v2864_v53, 1  ;;  %v2618_v62 = vsel %vm2832_vm7, %v708_v0, 0.0  ;;  %v831_v11 = vsel %vm576_vm8, %v817_v34, %v818_v43  ;;  %v1912_v14 = vld [vmem:[#allocation5 + $0x88] sm:$0xff]  }
 0x1b6   :  { %1820 = vmatpush3.bf16.msra.mxu1 %v1908_v51  ;;  %1775 = vmatprep.mubr.msk.bf16.mxu1 %vm1626_vm6, %v1627_v38  ;;  %vm787_vm2 = vcmp.eq.s32.totalorder %v2544_v12, 1  ;;  %vm789_vm5 = vcmp.eq.s32.totalorder %v2605_v10, 1  ;;  %v2628_v7 = vsel %vm790_vm14, %v710_v41, 0.0  ;;  %v834_v21 = vsel %vm576_vm8, %v814_v58, %v815_v3  ;;  %v2652_v20 = vpop.permute.xlu0 %772 }
 0x1b7   :  { %1821 = vmatprep.subr.bf16.mxu1 %v1909_v39  ;;  %v2636_v61 = vsel %vm787_vm2, %v707_v47, 0.0  ;;  %v695_v28 = vadd.f32 %v2270_v30, %v672_v57  ;;  %v844_v32 = vpack.c.bf16 %v833_v26, %v834_v21  ;;  %v832_v31 = vsel %vm576_vm8, %v816_v33, %v817_v34  ;;  %v1911_v30 = vld [vmem:[#allocation5 + $0x90] sm:$0xff]   ;;  %vm1629_vm6 = vmpackc.low %vm2832_vm7, %vm787_vm2 }
 0x1b8   :  { %v820_v51 = vrot.slane %v2618_v62, 7  ;;  %v2644_v63 = vsel %vm789_vm5, %v709_v45, 0.0  ;;  %v845_v8 = vpack.c.bf16 %v831_v11, %v832_v31  ;;  %v822_v58 = vrot.slane %v2628_v7, 7  ;;  %vm1632_vm4 = vmpackc.low %vm790_vm14, %vm789_vm5  ;;  %v1913_v11 = vld [vmem:[#allocation5 + $0x80] sm:$0xff]  }
 0x1b9   :  { %v819_v6 = vrot.slane %v2636_v61, 7  ;;  %v1630_v15 = vpack.c.bf16 %v708_v0, %v707_v47  ;;  %v821_v33 = vrot.slane %v2644_v63, 7  ;;  %v1633_v16 = vpack.c.bf16 %v710_v41, %v709_v45  ;;  %v2865_v41 = vld [vmem:[#allocation12_spill] sm:$0xff] }
 0x1ba   :  { %1804 = vmatmul.mubr.bf16.gmra.mxu0 %v844_v32  ;;  %1822 = vmatpush3.bf16.msra.mxu1 %v1909_v39  ;;  %v711_v2 = vmax.f32 %v695_v28, 0.0  ;;  %v1180_v3 = vrot.slane %v2504_v36, 1  ;;  %vm791_vm7 = vcmp.eq.s32.totalorder %v2652_v20, 1  ;;  %v1182_v52 = vrot.slane %v2865_v41, 1 }
 0x1bb   :  { %1807 = vmatprep.mubr.bf16.mxu0 %v845_v8  ;;  %1823 = vmatprep.subr.bf16.mxu1 %v1910_v42  ;;  %v829_v0 = vsel %vm576_vm8, %v819_v6, %v820_v51  ;;  %v827_v35 = vsel %vm576_vm8, %v821_v33, %v822_v58  ;;  %v830_v27 = vsel %vm576_vm8, %v818_v43, %v819_v6  ;;  %v1181_v39 = vrot.slane %v2334_v22, 1 }
 0x1bc   :  { %v2673_v34 = vsel %vm791_vm7, %v711_v2, 0.0  ;;  %v846_v38 = vpack.c.bf16 %v829_v0, %v830_v27  ;;  %v828_v47 = vsel %vm576_vm8, %v820_v51, %v821_v33  ;;  %v1636_v22 = vpack.c.bf16 %v712_v29, %v711_v2 }
 0x1bd   :  { %1776 = vmatmul.mubr.msk.bf16.gmra.mxu1 %vm1629_vm6, %v1630_v15  ;;  %v847_v57 = vpack.c.bf16 %v827_v35, %v828_v47  ;;  %v1210_v45 = vsel %vm641_vm9, %v1180_v3, %v1181_v39  ;;  %v823_v43 = vrot.slane %v2673_v34, 7  ;;  %v1209_v26 = vsel %vm641_vm9, %v1181_v39, %v1182_v52 }
 0x1be   :  { %1824 = vmatpush3.bf16.msra.mxu1 %v1910_v42  ;;  %1779 = vmatprep.mubr.msk.bf16.mxu1 %vm1632_vm4, %v1633_v16  ;;  %vm1635_vm4 = vmpackc.low %vm792_vm0, %vm791_vm7  ;;  %v1184_v21 = vrot.slane %v2373_v40, 1  ;;  %v1212_v42 = vpack.c.bf16 %v1209_v26, %v1210_v45  ;;  %v1186_v28 = vrot.slane %v2575_v9, 1  ;;  %v1183_v29 = vrot.slane %v2323_v49, 1 }
 0x1bf   :  { %1825 = vmatprep.subr.bf16.mxu1 %v1911_v30  ;;  %v825_v23 = vsel %vm576_vm8, %v823_v43, %v824_v25  ;;  %v1185_v32 = vrot.slane %v2448_v4, 1  ;;  %v826_v31 = vsel %vm576_vm8, %v822_v58, %v823_v43  ;;  %v1188_v8 = vrot.slane %v2588_v5, 1 }
 0x1c0   :  { %v1207_v40 = vsel %vm641_vm9, %v1183_v29, %v1184_v21  ;;  %v848_v9 = vpack.c.bf16 %v825_v23, %v826_v31  ;;  %v1208_v25 = vsel %vm641_vm9, %v1182_v52, %v1183_v29  ;;  %v1190_v58 = vrot.slane %v2636_v61, 1 }
 0x1c1   :  { %v1205_v51 = vsel %vm641_vm9, %v1185_v32, %v1186_v28  ;;  %v1213_v49 = vpack.c.bf16 %v1207_v40, %v1208_v25  ;;  %v1206_v4 = vsel %vm641_vm9, %v1184_v21, %v1185_v32  ;;  %v1187_v15 = vrot.slane %v2548_v59, 1 }
 0x1c2   :  { %1808 = vmatmul.mubr.bf16.gmra.mxu0 %v846_v38  ;;  %1826 = vmatpush3.bf16.msra.mxu1 %v1911_v30  ;;  %v1214_v6 = vpack.c.bf16 %v1205_v51, %v1206_v4  ;;  %v1189_v30 = vrot.slane %v2566_v17, 1  ;;  %v1192_v61 = vrot.slane %v2644_v63, 1  ;;  %v1194_v59 = vrot.slane %v2673_v34, 1 }
 0x1c3   :  { %1811 = vmatprep.mubr.bf16.mxu0 %v847_v57  ;;  %1827 = vmatprep.subr.bf16.mxu1 %v1912_v14  ;;  %v1203_v33 = vsel %vm641_vm9, %v1187_v15, %v1188_v8  ;;  %v1204_v2 = vsel %vm641_vm9, %v1186_v28, %v1187_v15  ;;  %v1191_v17 = vrot.slane %v2618_v62, 1  ;;  %v1193_v41 = vrot.slane %v2628_v7, 1 }
 0x1c4   :  { %v1201_v16 = vsel %vm641_vm9, %v1189_v30, %v1190_v58  ;;  %v1215_v0 = vpack.c.bf16 %v1203_v33, %v1204_v2  ;;  %v1202_v5 = vsel %vm641_vm9, %v1188_v8, %v1189_v30  ;;  %v1195_v34 = vrot.slane %v2515_v44, 1 }
 0x1c5   :  { %1780 = vmatmul.mubr.msk.bf16.gmra.mxu1 %vm1635_vm4, %v1636_v22  ;;  %v1216_v35 = vpack.c.bf16 %v1201_v16, %v1202_v5  ;;  %v1199_v52 = vsel %vm641_vm9, %v1191_v17, %v1192_v61  ;;  %v1197_v27 = vsel %vm641_vm9, %v1193_v41, %v1194_v59  ;;  %v1198_v63 = vsel %vm641_vm9, %v1192_v61, %v1193_v41  ;;  %v2754_v41 = vld [vmem:[%s2817_s4] ss:$0 sm:$0xff]  ;;  %s1988_s4 = smov [#allocation7]  }
 0x1c6   :  { %1828 = vmatpush3.bf16.msra.mxu1 %v1912_v14  ;;  %1831 = vmatprep.mubr.bf16.mxu1 %v1212_v42  ;;  %v1200_v14 = vsel %vm641_vm9, %v1190_v58, %v1191_v17  ;;  %v1218_v38 = vpack.c.bf16 %v1197_v27, %v1198_v63  ;;  %v1196_v62 = vsel %vm641_vm9, %v1194_v59, %v1195_v34  ;;  %vm2866_vm8 = vcmp.eq.s32.totalorder %v2222_v1, 1  ;;  %s1523_s12 = sshll.u32 %s1988_s4, 4  ;;  %s1524_s12 = int_to_ptr.vmem [resolvable:$true] %s1523_s12 }
 0x1c7   :  { %1829 = vmatprep.subr.bf16.mxu1 %v1913_v11  ;;  %v1217_v39 = vpack.c.bf16 %v1199_v52, %v1200_v14  ;;  %v1211_v7 = vsel %vm641_vm9, %v1195_v34, %v1180_v3  ;;  %vm2867_vm9 = vcmp.eq.s32.totalorder %v2863_v19, 1  ;;  %s1954_s13 = scalar_lea.vmem %s1524_s12, 128  ;;  %p1959_p11 = scmp.lt.s32.totalorder %s1524_s12, %s1524_s12 }
 0x1c8   :  { %v1219_v47 = vpack.c.bf16 %v1211_v7, %v1196_v62  ;;  %p1955_p10 = scmp.ne.s32.totalorder %s1524_s12, %s1954_s13  ;;  %p1960_p12 = scmp.lt.s32.totalorder %s1954_s13, %s1954_s13 }
 0x1ca   :  { %1812 = vmatmul.mubr.bf16.gmra.mxu0 %v848_v9  ;;  %1830 = vmatpush3.bf16.msra.mxu1 %v1913_v11  ;;  %p1961_p13 = por %p1960_p12, %p1959_p11 }
 0x1cc   :  { %p1962_p0 = pnand %p1961_p13, %p1955_p10 }
 0x1cd   :  { %1832 = vmatmul.mubr.bf16.vlgmr.msra.gmra.mxu1 %v1213_v49 }
 0x1ce   :  { %1835 = vmatprep.mubr.bf16.mxu1 %v1214_v6 }
 0x1d5   :  { %1836 = vmatmul.mubr.bf16.gmra.mxu1 %v1215_v0 }
 0x1d6   :  { %1839 = vmatprep.mubr.bf16.mxu1 %v1216_v35 }
 0x1dd   :  { %1840 = vmatmul.mubr.bf16.gmra.mxu1 %v1217_v39 }
 0x1de   :  { %1843 = vmatprep.mubr.bf16.mxu1 %v1218_v38 }
 0x1e5   :  { %1844 = vmatmul.mubr.bf16.gmra.mxu1 %v1219_v47 }
 0x26d   :  { %v1769_v57 = vpop.f32.mrf.mxu1 }
 0x26f   :  { %v972_v45 = vpop.f32.mrf.mxu1 }
 0x271   :  { %v1770_v43 = vpop.f32.mrf.mxu1 }
 0x272   :  { %v1801_v22 = vpop.f32.mrf.mxu0 }
 0x273   :  { %v975_v26 = vpop.f32.mrf.mxu1  ;;  %v1126_v16 = vadd.f32 %v1801_v22, %v1769_v57 }
 0x274   :  { %v1117_v11 = vpop.f32.mrf.mxu0 }
 0x275   :  { %v1773_v44 = vpop.f32.mrf.mxu1  ;;  %v1118_v15 = vadd.f32 %v1117_v11, %v972_v45 }
 0x276   :  { %v1802_v21 = vpop.f32.mrf.mxu0 }
 0x277   :  { %v988_v42 = vpop.f32.mrf.mxu1  ;;  %v1129_v2 = vadd.f32 %v1802_v21, %v1770_v43 }
 0x278   :  { %v1120_v28 = vpop.f32.mrf.mxu0 }
 0x279   :  { %v1774_v23 = vpop.f32.mrf.mxu1  ;;  %v1121_v61 = vadd.f32 %v1120_v28, %v975_v26 }
 0x27a   :  { %v1805_v29 = vpop.f32.mrf.mxu0 }
 0x27b   :  { %v991_v32 = vpop.f32.mrf.mxu1  ;;  %v1142_v27 = vadd.f32 %v1805_v29, %v1773_v44 }
 0x27c   :  { %v1133_v36 = vpop.f32.mrf.mxu0 }
 0x27d   :  { %v1777_v31 = vpop.f32.mrf.mxu1  ;;  %v1134_v38 = vadd.f32 %v1133_v36, %v988_v42 }
 0x27e   :  { %v1806_v3 = vpop.f32.mrf.mxu0 }
 0x27f   :  { %v1004_v40 = vpop.f32.mrf.mxu1  ;;  %v1145_v57 = vadd.f32 %v1806_v3, %v1774_v23 }
 0x280   :  { %v1136_v25 = vpop.f32.mrf.mxu0 }
 0x281   :  { %v2739_v55 = vpop.f32.mrf.mxu1  ;;  %v1137_v28 = vadd.f32 %v1136_v25, %v991_v32 }
 0x282   :  { %v1809_v8 = vpop.f32.mrf.mxu0 }
 0x283   :  { %v2741_v9 = vpop.f32.mrf.mxu1 }
 0x284   :  { %v1149_v30 = vpop.f32.mrf.mxu0 }
 0x285   :  { %v2743_v51 = vpop.f32.mrf.mxu1 }
 0x286   :  { %v1810_v17 = vpop.f32.mrf.mxu0 }
 0x287   :  { %v2745_v49 = vpop.f32.mrf.mxu1 }
 0x288   :  { %v1152_v45 = vpop.f32.mrf.mxu0 }
 0x289   :  { %v2747_v4 = vpop.f32.mrf.mxu1 }
 0x28a   :  { %v1813_v3 = vpop.f32.mrf.mxu0 }
 0x28b   :  { %v2749_v6 = vpop.f32.mrf.mxu1  ;;  %v1174_v13 = vadd.f32 %v1813_v3, %v2743_v51 }
 0x28d   :  { %v1833_v58 = vpop.f32.mrf.mxu1 }
 0x28e   :  { %v1384_v35 = vadd.f32 %v1833_v58, %v1126_v16  ;;  %v1150_v16 = vadd.f32 %v1149_v30, %v1004_v40 }
 0x28f   :  { %v1319_v33 = vpop.f32.mrf.mxu1 }
 0x290   :  { %v1382_v0 = vadd.f32 %v1319_v33, %v1118_v15  ;;  %v1407_v62 = vadd.f32 %v2754_v41, %v1384_v35  ;;  %v1158_v15 = vadd.f32 %v1809_v8, %v1777_v31 }
 0x291   :  { %v1834_v5 = vpop.f32.mrf.mxu1 }
 0x292   :  { %v1385_v59 = vadd.f32 %v1834_v5, %v1129_v2  ;;  %v1405_v14 = vadd.f32 %v2754_v41, %v1382_v0  ;;  %v1423_v29 = vsel %vm779_vm10, %v1407_v62, -3.4028235e+38  ;;  %vm2868_vm10 = vcmp.eq.s32.totalorder %v2462_v60, 1 }
 0x293   :  { %v1322_v52 = vpop.f32.mrf.mxu1 }
 0x294   :  { %v1408_v39 = vadd.f32 %v2754_v41, %v1385_v59  ;;  %v1383_v63 = vadd.f32 %v1322_v52, %v1121_v61  ;;  %v1421_v22 = vsel %vm777_vm15, %v1405_v14, -3.4028235e+38  ;;  %v1165_v61 = vpop.f32.mrf.mxu0  ;;  %v1161_v59 = vadd.f32 %v1810_v17, %v2739_v55 }
 0x295   :  { %v1837_v34 = vpop.f32.mrf.mxu1  ;;  %v1153_v14 = vadd.f32 %v1152_v45, %v2741_v9  ;;  %vm1505_vm15 = vcmask 1043459  }
 0x296   :  { %v1406_v7 = vadd.f32 %v2754_v41, %v1383_v63  ;;  %v1388_v47 = vadd.f32 %v1837_v34, %v1142_v27  ;;  %v1424_v26 = vsel %vm780_vm12, %v1408_v39, -3.4028235e+38  ;;  %v1814_v34 = vpop.f32.mrf.mxu0  ;;  %vm1501_vm12 = vcmask 1041409  }
 0x297   :  { %v1335_v43 = vpop.f32.mrf.mxu1  ;;  %v1444_v58 = vmax.f32 %v1423_v29, %v1424_v26 }
 0x298   :  { %v1422_v11 = vsel %vm778_vm11, %v1406_v7, -3.4028235e+38  ;;  %v1386_v44 = vadd.f32 %v1335_v43, %v1134_v38  ;;  %v1411_v23 = vadd.f32 %v2754_v41, %v1388_v47  ;;  %v1168_v51 = vpop.f32.mrf.mxu0  ;;  %vm2869_vm11 = vcmp.eq.s32.totalorder %v2275_v37, 1 }
 0x299   :  { %v1437_v21 = vmax.f32 %v1421_v22, %v1422_v11  ;;  %v1838_v42 = vpop.f32.mrf.mxu1  ;;  %v1445_v35 = vrot.slane %v1444_v58, 4 }
 0x29a   :  { %v1389_v36 = vadd.f32 %v1838_v42, %v1145_v57  ;;  %v1409_v54 = vadd.f32 %v2754_v41, %v1386_v44  ;;  %v1427_v32 = vsel %vm783_vm3, %v1411_v23, -3.4028235e+38  ;;  %v1166_v57 = vadd.f32 %v1165_v61, %v2745_v49 }
 0x29b   :  { %v1338_v24 = vpop.f32.mrf.mxu1  ;;  %v1438_v2 = vrot.slane %v1437_v21, 4  ;;  %v1446_v38 = vmax.f32 %v1444_v58, %v1445_v35  ;;  %v1177_v49 = vadd.f32 %v1814_v34, %v2747_v4 }
 0x29c   :  { %v1412_v33 = vadd.f32 %v2754_v41, %v1389_v36  ;;  %v1387_v48 = vadd.f32 %v1338_v24, %v1137_v28  ;;  %v1425_v40 = vsel %vm781_vm13, %v1409_v54, -3.4028235e+38  ;;  %vm1503_vm13 = vcmask 1042434  }
 0x29d   :  { %v1841_v0 = vpop.f32.mrf.mxu1  ;;  %v1439_v52 = vmax.f32 %v1437_v21, %v1438_v2  ;;  %v1447_v21 = vrot.slane %v1446_v38, 2 }
 0x29e   :  { %v1428_v46 = vsel %vm784_vm1, %v1412_v33, -3.4028235e+38  ;;  %v1410_v25 = vadd.f32 %v2754_v41, %v1387_v48  ;;  %v1392_v5 = vadd.f32 %v1841_v0, %v1158_v15  ;;  %v1169_v15 = vadd.f32 %v1168_v51, %v2749_v6 }
 0x29f   :  { %v1458_v31 = vmax.f32 %v1427_v32, %v1428_v46  ;;  %v1351_v8 = vpop.f32.mrf.mxu1  ;;  %v1440_v43 = vrot.slane %v1439_v52, 2  ;;  %vm1511_vm1 = vcmask 1046534  }
 0x2a0   :  { %v1426_v30 = vsel %vm2866_vm8, %v1410_v25, -3.4028235e+38  ;;  %v1390_v56 = vadd.f32 %v1351_v8, %v1150_v16  ;;  %v1415_v39 = vadd.f32 %v2754_v41, %v1392_v5  ;;  %v1448_v16 = vmax.f32 %v1446_v38, %v1447_v21 }
 0x2a1   :  { %v1451_v27 = vmax.f32 %v1425_v40, %v1426_v30  ;;  %v1842_v18 = vpop.f32.mrf.mxu1  ;;  %v1459_v62 = vrot.slane %v1458_v31, 4  ;;  %v1441_v54 = vmax.f32 %v1439_v52, %v1440_v43 }
 0x2a2   :  { %v1393_v63 = vadd.f32 %v1842_v18, %v1161_v59  ;;  %v1413_v17 = vadd.f32 %v2754_v41, %v1390_v56  ;;  %v1431_v45 = vsel %vm787_vm2, %v1415_v39, -3.4028235e+38  ;;  %v1449_v8 = vrot.slane %v1448_v16, 1 }
 0x2a3   :  { %v1452_v7 = vrot.slane %v1451_v27, 4  ;;  %v1354_v55 = vpop.f32.mrf.mxu1  ;;  %v1460_v42 = vmax.f32 %v1458_v31, %v1459_v62  ;;  %v1442_v61 = vrot.slane %v1441_v54, 1  ;;  %vm1513_vm2 = vcmask 1047559  }
 0x2a4   :  { %v1416_v1 = vadd.f32 %v2754_v41, %v1393_v63  ;;  %v1391_v47 = vadd.f32 %v1354_v55, %v1153_v14  ;;  %v1429_v36 = vsel %vm2868_vm10, %v1413_v17, -3.4028235e+38  ;;  %v1450_v62 = vmax.f32 %v1448_v16, %v1449_v8 }
 0x2a5   :  { %v1453_v22 = vmax.f32 %v1451_v27, %v1452_v7  ;;  %v1845_v9 = vpop.f32.mrf.mxu1  ;;  %v1461_v2 = vrot.slane %v1460_v42, 2  ;;  %v1443_v63 = vmax.f32 %v1441_v54, %v1442_v61 }
 0x2a6   :  { %v1432_v26 = vsel %vm2867_vm9, %v1416_v1, -3.4028235e+38  ;;  %v1414_v11 = vadd.f32 %v2754_v41, %v1391_v47  ;;  %v1396_v44 = vadd.f32 %v1845_v9, %v1174_v13 }
 0x2a7   :  { %v1454_v28 = vrot.slane %v1453_v22, 2  ;;  %v1472_v29 = vmax.f32 %v1431_v45, %v1432_v26  ;;  %v1367_v23 = vpop.f32.mrf.mxu1  ;;  %v1462_v56 = vmax.f32 %v1460_v42, %v1461_v2  ;;  %v1502_v10 = vsel %vm1501_vm12, %v1450_v62, %v1443_v63 }
 0x2a8   :  { %v1430_v12 = vsel %vm2869_vm11, %v1414_v11, -3.4028235e+38  ;;  %v1394_v3 = vadd.f32 %v1367_v23, %v1166_v57  ;;  %v1419_v33 = vadd.f32 %v2754_v41, %v1396_v44 }
 0x2a9   :  { %v1473_v19 = vrot.slane %v1472_v29, 4  ;;  %v1465_v58 = vmax.f32 %v1429_v36, %v1430_v12  ;;  %v1846_v24 = vpop.f32.mrf.mxu1  ;;  %v1455_v0 = vmax.f32 %v1453_v22, %v1454_v28  ;;  %v1463_v7 = vrot.slane %v1462_v56, 1 }
 0x2aa   :  { %v1397_v48 = vadd.f32 %v1846_v24, %v1177_v49  ;;  %v1417_v46 = vadd.f32 %v2754_v41, %v1394_v3  ;;  %v1435_v6 = vsel %vm791_vm7, %v1419_v33, -3.4028235e+38 }
 0x2ab   :  { %v1466_v4 = vrot.slane %v1465_v58, 4  ;;  %v1370_v32 = vpop.f32.mrf.mxu1  ;;  %v1474_v60 = vmax.f32 %v1472_v29, %v1473_v19  ;;  %v1456_v59 = vrot.slane %v1455_v0, 1  ;;  %v1464_v43 = vmax.f32 %v1462_v56, %v1463_v7 }
 0x2ac   :  { %v1420_v37 = vadd.f32 %v2754_v41, %v1397_v48  ;;  %v1395_v25 = vadd.f32 %v1370_v32, %v1169_v15  ;;  %v1433_v27 = vsel %vm789_vm5, %v1417_v46, -3.4028235e+38 }
 0x2ad   :  { %v1467_v5 = vmax.f32 %v1465_v58, %v1466_v4  ;;  %v1475_v52 = vrot.slane %v1474_v60, 2  ;;  %v1457_v50 = vmax.f32 %v1455_v0, %v1456_v59 }
 0x2ae   :  { %v1436_v35 = vsel %vm792_vm0, %v1420_v37, -3.4028235e+38  ;;  %v1418_v31 = vadd.f32 %v2754_v41, %v1395_v25  ;;  %vm1509_vm0 = vcmask 1045509  }
 0x2af   :  { %v1468_v40 = vrot.slane %v1467_v5, 2  ;;  %v1486_v30 = vmax.f32 %v1435_v6, %v1436_v35  ;;  %v1476_v55 = vmax.f32 %v1474_v60, %v1475_v52  ;;  %v1504_v57 = vsel %vm1503_vm13, %v1457_v50, %v1502_v10 }
 0x2b0   :  { %v1434_v18 = vsel %vm790_vm14, %v1418_v31, -3.4028235e+38  ;;  %vm1507_vm14 = vcmask 1044484   ;;  %v1506_v26 = vsel %vm1505_vm15, %v1464_v43, %v1504_v57 }
 0x2b1   :  { %v1469_v14 = vmax.f32 %v1467_v5, %v1468_v40  ;;  %v1487_v20 = vrot.slane %v1486_v30, 4  ;;  %v1479_v39 = vmax.f32 %v1433_v27, %v1434_v18  ;;  %v1477_v22 = vrot.slane %v1476_v55, 1 }
 0x2b3   :  { %v1470_v34 = vrot.slane %v1469_v14, 1  ;;  %v1488_v41 = vmax.f32 %v1486_v30, %v1487_v20  ;;  %v1480_v38 = vrot.slane %v1479_v39, 4  ;;  %v1478_v51 = vmax.f32 %v1476_v55, %v1477_v22 }
 0x2b5   :  { %v1489_v13 = vrot.slane %v1488_v41, 2  ;;  %v1481_v17 = vmax.f32 %v1479_v39, %v1480_v38  ;;  %v1471_v1 = vmax.f32 %v1469_v14, %v1470_v34 }
 0x2b7   :  { %v1482_v53 = vrot.slane %v1481_v17, 2  ;;  %v1490_v47 = vmax.f32 %v1488_v41, %v1489_v13  ;;  %v1508_v44 = vsel %vm1507_vm14, %v1471_v1, %v1506_v26 }
 0x2b8   :  { %v1510_v28 = vsel %vm1509_vm0, %v1478_v51, %v1508_v44 }
 0x2b9   :  { %v1483_v9 = vmax.f32 %v1481_v17, %v1482_v53  ;;  %v1491_v45 = vrot.slane %v1490_v47, 1 }
 0x2bb   :  { %v1484_v11 = vrot.slane %v1483_v9, 1  ;;  %v1492_v42 = vmax.f32 %v1490_v47, %v1491_v45 }
 0x2bd   :  { %v1485_v21 = vmax.f32 %v1483_v9, %v1484_v11 }
 0x2bf   :  { %v1512_v29 = vsel %vm1511_vm1, %v1485_v21, %v1510_v28 }
 0x2c0   :  { %v1514_v23 = vsel %vm1513_vm2, %v1492_v42, %v1512_v29 }
 0x2c1   :  { %1516 = vst [vmem:[#allocation7] sm:$0xff] %v1514_v23 }
 0x2c2   :  { %1965 = shalt.err (!%p1962_p0)
}
 0x2c3   :  { %1526 = dma.vmem_to_hbm [thread:$0]  %s1524_s12, 128, %s2818_s5, [#allocation4]  }
 0x2c4   :  { %1978 = dma.done.wait [#allocation4], 128  }
 0x2c5   :  { %1979 = vsyncadd [#allocation4], 4294967168 }
 0x2c6   :  { %1530 = vsyncpa [#allocation3], 1 }
 0x2c7   :  { %1531 = vsyncpa [#allocation6], 1 }
 0x2c8   :  { %1532 = vsyncpa [#allocation4], 1 }

</bundles_post_ra>
